<compile_context>
chip_gen: v7x
topology: tpu7x:2x2x1
jax: 0.10.0
libtpu: 0.0.40
codegen_flags: <defaults>
</compile_context>

<pallas_src>
import jax
import jax.numpy as jnp
from jax.experimental import pallas as pl
from jax.experimental.pallas import tpu as pltpu

# ----------------------------- model hyper-params -----------------------------
B = 2                            # batch
C = 3                            # image channels (NCHW)
IMG = 16                         # image height/width (small stand-in for 224)
PATCH = 8                        # patch size
NPATCH = (IMG // PATCH) ** 2     # 4 vision tokens per image
CPP = C * PATCH * PATCH          # unfolded patch row length (192)
D = 32                           # d_model (small stand-in for 768)
NH = 2                           # attention heads
DH = D // NH                     # head dim (16)
MLP = 128                        # MLP hidden
T = 8                            # text sequence length
V = 64                           # vocab size
VP = 128                         # lane-padded vocab (LM head / logits tile)
SCALE = 1.0 / float(DH) ** 0.5
EPS = 1e-5
NEG = -1e9

VMEM = pl.BlockSpec(memory_space=pltpu.MemorySpace.VMEM)


# ----------------------------- in-kernel helpers ------------------------------
def _ln(x, g, b):
    # one-pass stats: var = E[x^2] - E[x]^2 (the two reductions are independent)
    mu = jnp.mean(x, axis=-1, keepdims=True)
    ms = jnp.mean(x * x, axis=-1, keepdims=True)
    var = ms - mu * mu
    return (x - mu) * jax.lax.rsqrt(var + EPS) * g + b


def _mm(x, w):
    # bf16 MXU matmul with f32 accumulation (w is already bf16).
    return jnp.dot(x.astype(jnp.bfloat16), w, preferred_element_type=jnp.float32)


def _mha(q, k, v, wo, bo, mask):
    """Batched multi-head attention + output projection, no lane slicing.

    Per head h the non-head lanes of Q (and V) are zeroed with a constant lane
    mask, so QK^T contracts only that head's lanes and PV lands in that head's
    output lanes.  Summing over heads reconstructs concat(heads) as a lane-dense
    [Tq, D] vreg accumulator which goes through one full-Wo matmul.
    `mask` is additive [Tq, Tk] with batch/causal/padding structure baked in.
    """
    tq = q.shape[0]
    lane = jax.lax.broadcasted_iota(jnp.int32, (1, D), 1)
    kb = k.astype(jnp.bfloat16)
    out = jnp.zeros((tq, D), jnp.float32)
    for h in range(NH):
        hm = ((lane >= h * DH) & (lane < (h + 1) * DH)).astype(jnp.float32)
        qh = (q * hm).astype(jnp.bfloat16)
        s = jax.lax.dot_general(qh, kb, (((1,), (1,)), ((), ())),
                                preferred_element_type=jnp.float32) * SCALE
        s = s + mask
        s = s - jnp.max(s, axis=-1, keepdims=True)
        p = jnp.exp(s)
        p = p * pl.reciprocal(jnp.sum(p, axis=-1, keepdims=True), approx=True)
        vh = (v * hm).astype(jnp.bfloat16)
        out = out + jnp.dot(p.astype(jnp.bfloat16), vh,
                            preferred_element_type=jnp.float32)
    return _mm(out, wo) + bo


# ----------------------- fused vision-encoder + decoder + CE --------------------
def _vlm_kernel(*refs):
    (patch_ref, pos_ref, vmask_ref,
     v_pw, v_pb, v_g1, v_b1, v_qkvw, v_qkvb, v_ow, v_ob,
     v_g2, v_b2, v_w1, v_bb1, v_w2, v_bb2, v_gf, v_bf,
     x_ref, smask_ref, xmask_ref, lab_ref, lmask_ref,
     d_g1, d_b1, d_qkvw, d_qkvb, d_ow, d_ob,
     d_gx, d_bx, d_xqw, d_xqb, d_xkvw, d_xkvb, d_xow, d_xob,
     d_g2, d_b2, d_w1, d_bb1, d_w2, d_bb2, d_gf, d_bf,
     lm_w_ref, lm_b_ref, o_ref) = refs

    # ---------------- vision encoder: all B*NPATCH tokens at once ----------------
    xv = _mm(patch_ref[...], v_pw[...]) + v_pb[...] + pos_ref[...]
    vmask = vmask_ref[...]                                  # block-diag batch mask

    h = _ln(xv, v_g1[...], v_b1[...])
    qkv = _mm(h, v_qkvw[...]) + v_qkvb[...]
    xv = xv + _mha(qkv[:, :D], qkv[:, D:2 * D], qkv[:, 2 * D:],
                   v_ow[...], v_ob[...], vmask)

    h = _ln(xv, v_g2[...], v_b2[...])
    h = jax.nn.gelu(_mm(h, v_w1[...]) + v_bb1[...])
    xv = xv + _mm(h, v_w2[...]) + v_bb2[...]

    vis = _ln(xv, v_gf[...], v_bf[...])                     # stays in vregs / VMEM

    # --------------------------- caption decoder --------------------------------
    x = x_ref[...]                                          # [B*T, D] tok+pos emb

    # masked causal self-attention (LN + fused QKV + batched MHA + out-proj)
    h = _ln(x, d_g1[...], d_b1[...])
    qkv = _mm(h, d_qkvw[...]) + d_qkvb[...]
    x = x + _mha(qkv[:, :D], qkv[:, D:2 * D], qkv[:, 2 * D:],
                 d_ow[...], d_ob[...], smask_ref[...])

    # cross-attention to the (never-spilled) vision embedding, fused KV projection
    h = _ln(x, d_gx[...], d_bx[...])
    q = _mm(h, d_xqw[...]) + d_xqb[...]
    kv = _mm(vis, d_xkvw[...]) + d_xkvb[...]
    x = x + _mha(q, kv[:, :D], kv[:, D:], d_xow[...], d_xob[...], xmask_ref[...])

    # MLP (hidden never leaves VMEM/vregs)
    h = _ln(x, d_g2[...], d_b2[...])
    h = jax.nn.gelu(_mm(h, d_w1[...]) + d_bb1[...])
    x = x + _mm(h, d_w2[...]) + d_bb2[...]

    x = _ln(x, d_gf[...], d_bf[...])

    # ------------- LM head (vocab padded to 128 lanes) + masked-mean CE ----------
    logits = _mm(x, lm_w_ref[...]) + lm_b_ref[...]          # [B*T, VP] f32, pad=-1e9
    m = jnp.max(logits, axis=-1, keepdims=True)
    lse = m + jnp.log(jnp.sum(jnp.exp(logits - m), axis=-1, keepdims=True))
    ids = jax.lax.broadcasted_iota(jnp.int32, logits.shape, 1)
    tgt = jnp.sum(jnp.where(ids == lab_ref[...], logits, 0.0), axis=-1, keepdims=True)
    msk = lmask_ref[...]
    loss = (lse - tgt) * msk
    s_loss = jnp.sum(loss, keepdims=True)                   # (1,1)
    s_msk = jnp.sum(msk, keepdims=True)                     # (1,1)
    # TODO(synk): a (1,1) SMEM scalar output would be marginally cheaper; keep the
    # proven (1,1) VMEM scalar path.
    o_ref[...] = s_loss / jnp.maximum(s_msk, 1.0)


# --------------------------------- wrapper --------------------------------------
def vlm_forward(params, input_ids, attention_mask, pixel_values, labels):
    b, c, hh, ww = pixel_values.shape
    nph, npw = hh // PATCH, ww // PATCH
    npb = nph * npw
    t = input_ids.shape[1]
    am = attention_mask.astype(jnp.float32)

    # Conv2d(kernel=stride=PATCH) patch embedding as unfold + matmul, whole batch.
    patches = pixel_values.reshape(b, c, nph, PATCH, npw, PATCH)
    patches = patches.transpose(0, 2, 4, 1, 3, 5).reshape(b * npb, c * PATCH * PATCH)

    pos_tiled = jnp.tile(params["vis"]["pos"], (b, 1))             # [B*NPATCH, D]

    # vision self-attn: block-diagonal over batch (images don't attend each other)
    vb = jnp.arange(b * npb) // npb
    vis_same = (vb[:, None] == vb[None, :]).astype(jnp.float32)
    vmask = (1.0 - vis_same) * NEG

    # decoder self-attn: block-diag batch x causal x key-padding mask  [B*T, B*T]
    tb = jnp.arange(b * t) // t
    tp = jnp.arange(b * t) % t
    same = (tb[:, None] == tb[None, :]).astype(jnp.float32)
    causal = (tp[None, :] <= tp[:, None]).astype(jnp.float32)
    key_ok = am.reshape(1, b * t)
    smask = (1.0 - same * causal * key_ok) * NEG

    # cross-attn: each text token attends only its own image's patches [B*T, B*NPATCH]
    xsame = (tb[:, None] == vb[None, :]).astype(jnp.float32)
    xmask = (1.0 - xsame) * NEG

    # token + positional embeddings (gather stays in glue)
    x_emb = (jnp.take(params["tok_emb"], input_ids, axis=0)
             + params["txt_pos"][:, :t]).reshape(b * t, D)

    # HF causal-LM convention: position t predicts token t+1; last position masked.
    shifted_labels = jnp.concatenate(
        [labels[:, 1:], jnp.zeros((b, 1), labels.dtype)], axis=1
    ).astype(jnp.int32).reshape(b * t, 1)
    loss_mask = jnp.concatenate(
        [am[:, 1:], jnp.zeros((b, 1), jnp.float32)], axis=1).reshape(b * t, 1)

    pv, pd = params["vis"], params["dec"]
    args = [patches, pos_tiled, vmask,
            pv["patch_w"], pv["patch_b"], pv["ln1_g"], pv["ln1_b"],
            pv["qkv_w"], pv["qkv_b"], pv["o_w"], pv["o_b"],
            pv["ln2_g"], pv["ln2_b"], pv["fc1_w"], pv["fc1_b"],
            pv["fc2_w"], pv["fc2_b"], pv["lnf_g"], pv["lnf_b"],
            x_emb, smask, xmask, shifted_labels, loss_mask,
            pd["ln1_g"], pd["ln1_b"], pd["qkv_w"], pd["qkv_b"], pd["o_w"], pd["o_b"],
            pd["lnx_g"], pd["lnx_b"], pd["xq_w"], pd["xq_b"],
            pd["xkv_w"], pd["xkv_b"], pd["xo_w"], pd["xo_b"],
            pd["ln2_g"], pd["ln2_b"], pd["fc1_w"], pd["fc1_b"],
            pd["fc2_w"], pd["fc2_b"], pd["lnf_g"], pd["lnf_b"],
            params["lm_w"], params["lm_b"]]

    loss = pl.pallas_call(
        _vlm_kernel,
        out_shape=jax.ShapeDtypeStruct((1, 1), jnp.float32),
        in_specs=[VMEM] * len(args),
        out_specs=VMEM,
    )(*args)
    return loss[0, 0]


# --------------------------- parameter initialization --------------------------
def init_params(key):
    keys = iter(jax.random.split(key, 32))

    def w(din, dout):   # bf16 matmul weights (halves DMA bytes, feeds MXU natively)
        return (jax.random.normal(next(keys), (din, dout), jnp.float32) * 0.02
                ).astype(jnp.bfloat16)

    def bias(dout):
        return jnp.zeros((1, dout), jnp.float32)

    def ln(d):
        return jnp.ones((1, d), jnp.float32), jnp.zeros((1, d), jnp.float32)

    vis = {}
    vis["patch_w"], vis["patch_b"] = w(CPP, D), bias(D)
    vis["pos"] = jax.random.normal(next(keys), (NPATCH, D), jnp.float32) * 0.02
    vis["ln1_g"], vis["ln1_b"] = ln(D)
    vis["qkv_w"], vis["qkv_b"] = w(D, 3 * D), bias(3 * D)        # fused Q/K/V
    vis["o_w"], vis["o_b"] = w(D, D), bias(D)
    vis["ln2_g"], vis["ln2_b"] = ln(D)
    vis["fc1_w"], vis["fc1_b"] = w(D, MLP), bias(MLP)
    vis["fc2_w"], vis["fc2_b"] = w(MLP, D), bias(D)
    vis["lnf_g"], vis["lnf_b"] = ln(D)

    dec = {}
    dec["ln1_g"], dec["ln1_b"] = ln(D)
    dec["qkv_w"], dec["qkv_b"] = w(D, 3 * D), bias(3 * D)        # fused Q/K/V
    dec["o_w"], dec["o_b"] = w(D, D), bias(D)
    dec["lnx_g"], dec["lnx_b"] = ln(D)
    dec["xq_w"], dec["xq_b"] = w(D, D), bias(D)
    dec["xkv_w"], dec["xkv_b"] = w(D, 2 * D), bias(2 * D)        # fused cross K/V
    dec["xo_w"], dec["xo_b"] = w(D, D), bias(D)
    dec["ln2_g"], dec["ln2_b"] = ln(D)
    dec["fc1_w"], dec["fc1_b"] = w(D, MLP), bias(MLP)
    dec["fc2_w"], dec["fc2_b"] = w(MLP, D), bias(D)
    dec["lnf_g"], dec["lnf_b"] = ln(D)

    # LM head: vocab zero-padded V(=64) -> VP(=128) lanes; padded bias = -1e9 so the
    # padded logits contribute nothing to the LSE and the logits tile is lane-dense.
    lm_w = jnp.pad(w(D, V), ((0, 0), (0, VP - V)))
    lm_b = jnp.pad(bias(V), ((0, 0), (0, VP - V)), constant_values=NEG)

    return {
        "vis": vis,
        "dec": dec,
        "tok_emb": jax.random.normal(next(keys), (V, D), jnp.float32) * 0.02,
        "txt_pos": jax.random.normal(next(keys), (1, T, D), jnp.float32) * 0.02,
        "lm_w": lm_w,
        "lm_b": lm_b,
    }


# --------------------------------- top level ------------------------------------
@jax.jit
def vision_language_model(params, input_ids, attention_mask, pixel_values, labels):
    return vlm_forward(params, input_ids, attention_mask, pixel_values, labels)


# ------------------------------------ main --------------------------------------
if __name__ == "__main__":
    key = jax.random.PRNGKey(0)
    kp, k_img, k_ids = jax.random.split(key, 3)

    params = init_params(kp)
    pixel_values = jax.random.normal(k_img, (B, C, IMG, IMG), jnp.float32)   # NCHW
    input_ids = jax.random.randint(k_ids, (B, T), 0, V, dtype=jnp.int32)
    attention_mask = jnp.concatenate(
        [jnp.ones((B, T - 2), jnp.int32), jnp.zeros((B, 2), jnp.int32)], axis=1)
    labels = input_ids   # caption labels == input ids (shift handled inside)

    loss = vision_language_model(params, input_ids, attention_mask, pixel_values, labels)
    jax.block_until_ready(loss)
    assert loss.shape == () and bool(jnp.isfinite(loss))
    print("KERNEL_OK")
</pallas_src>

<mosaic_0001>
module attributes {stable_mosaic.version = 11 : i64} {
  func.func @_vlm_kernel(%arg0: memref<8x192xf32, #tpu.memory_space<vmem>>, %arg1: memref<8x32xf32, #tpu.memory_space<vmem>>, %arg2: memref<8x8xf32, #tpu.memory_space<vmem>>, %arg3: memref<192x32xbf16, #tpu.memory_space<vmem>>, %arg4: memref<1x32xf32, #tpu.memory_space<vmem>>, %arg5: memref<1x32xf32, #tpu.memory_space<vmem>>, %arg6: memref<1x32xf32, #tpu.memory_space<vmem>>, %arg7: memref<32x96xbf16, #tpu.memory_space<vmem>>, %arg8: memref<1x96xf32, #tpu.memory_space<vmem>>, %arg9: memref<32x32xbf16, #tpu.memory_space<vmem>>, %arg10: memref<1x32xf32, #tpu.memory_space<vmem>>, %arg11: memref<1x32xf32, #tpu.memory_space<vmem>>, %arg12: memref<1x32xf32, #tpu.memory_space<vmem>>, %arg13: memref<32x128xbf16, #tpu.memory_space<vmem>>, %arg14: memref<1x128xf32, #tpu.memory_space<vmem>>, %arg15: memref<128x32xbf16, #tpu.memory_space<vmem>>, %arg16: memref<1x32xf32, #tpu.memory_space<vmem>>, %arg17: memref<1x32xf32, #tpu.memory_space<vmem>>, %arg18: memref<1x32xf32, #tpu.memory_space<vmem>>, %arg19: memref<16x32xf32, #tpu.memory_space<vmem>>, %arg20: memref<16x16xf32, #tpu.memory_space<vmem>>, %arg21: memref<16x8xf32, #tpu.memory_space<vmem>>, %arg22: memref<16x1xi32, #tpu.memory_space<vmem>>, %arg23: memref<16x1xf32, #tpu.memory_space<vmem>>, %arg24: memref<1x32xf32, #tpu.memory_space<vmem>>, %arg25: memref<1x32xf32, #tpu.memory_space<vmem>>, %arg26: memref<32x96xbf16, #tpu.memory_space<vmem>>, %arg27: memref<1x96xf32, #tpu.memory_space<vmem>>, %arg28: memref<32x32xbf16, #tpu.memory_space<vmem>>, %arg29: memref<1x32xf32, #tpu.memory_space<vmem>>, %arg30: memref<1x32xf32, #tpu.memory_space<vmem>>, %arg31: memref<1x32xf32, #tpu.memory_space<vmem>>, %arg32: memref<32x32xbf16, #tpu.memory_space<vmem>>, %arg33: memref<1x32xf32, #tpu.memory_space<vmem>>, %arg34: memref<32x64xbf16, #tpu.memory_space<vmem>>, %arg35: memref<1x64xf32, #tpu.memory_space<vmem>>, %arg36: memref<32x32xbf16, #tpu.memory_space<vmem>>, %arg37: memref<1x32xf32, #tpu.memory_space<vmem>>, %arg38: memref<1x32xf32, #tpu.memory_space<vmem>>, %arg39: memref<1x32xf32, #tpu.memory_space<vmem>>, %arg40: memref<32x128xbf16, #tpu.memory_space<vmem>>, %arg41: memref<1x128xf32, #tpu.memory_space<vmem>>, %arg42: memref<128x32xbf16, #tpu.memory_space<vmem>>, %arg43: memref<1x32xf32, #tpu.memory_space<vmem>>, %arg44: memref<1x32xf32, #tpu.memory_space<vmem>>, %arg45: memref<1x32xf32, #tpu.memory_space<vmem>>, %arg46: memref<32x128xbf16, #tpu.memory_space<vmem>>, %arg47: memref<1x128xf32, #tpu.memory_space<vmem>>, %arg48: memref<1x1xf32, #tpu.memory_space<vmem>>) attributes {dimension_semantics = [], scalar_prefetch = 0 : i64, scratch_operands = 0 : i64, tpu.core_type = #tpu.core_type<tc>} {
    %c0 = arith.constant 0 : index
    %c0_0 = arith.constant 0 : index
    %0 = vector.load %arg0[%c0, %c0_0] : memref<8x192xf32, #tpu.memory_space<vmem>>, vector<8x192xf32>
    %c0_1 = arith.constant 0 : index
    %c0_2 = arith.constant 0 : index
    %1 = vector.load %arg3[%c0_1, %c0_2] : memref<192x32xbf16, #tpu.memory_space<vmem>>, vector<192x32xbf16>
    %2 = arith.truncf %0 : vector<8x192xf32> to vector<8x192xbf16>
    %cst = arith.constant dense<0.000000e+00> : vector<8x32xf32>
    %3 = tpu.matmul %2, %1, %cst {dimension_numbers = #tpu.dot_dimension_numbers<[1], [0], [0], [1], [0, 0, 1, 1], [], []>} : vector<8x192xbf16>, vector<192x32xbf16>, vector<8x32xf32> -> vector<8x32xf32>
    %c0_3 = arith.constant 0 : index
    %c0_4 = arith.constant 0 : index
    %4 = vector.load %arg4[%c0_3, %c0_4] : memref<1x32xf32, #tpu.memory_space<vmem>>, vector<1x32xf32>
    %5 = vector.broadcast %4 : vector<1x32xf32> to vector<8x32xf32>
    %6 = arith.addf %3, %5 : vector<8x32xf32>
    %c0_5 = arith.constant 0 : index
    %c0_6 = arith.constant 0 : index
    %7 = vector.load %arg1[%c0_5, %c0_6] : memref<8x32xf32, #tpu.memory_space<vmem>>, vector<8x32xf32>
    %8 = arith.addf %6, %7 : vector<8x32xf32>
    %c0_7 = arith.constant 0 : index
    %c0_8 = arith.constant 0 : index
    %9 = vector.load %arg2[%c0_7, %c0_8] : memref<8x8xf32, #tpu.memory_space<vmem>>, vector<8x8xf32>
    %c0_9 = arith.constant 0 : index
    %c0_10 = arith.constant 0 : index
    %10 = vector.load %arg5[%c0_9, %c0_10] : memref<1x32xf32, #tpu.memory_space<vmem>>, vector<1x32xf32>
    %c0_11 = arith.constant 0 : index
    %c0_12 = arith.constant 0 : index
    %11 = vector.load %arg6[%c0_11, %c0_12] : memref<1x32xf32, #tpu.memory_space<vmem>>, vector<1x32xf32>
    %cst_13 = arith.constant dense<0.000000e+00> : vector<8xf32>
    %12 = vector.multi_reduction <add>, %8, %cst_13 [1] : vector<8x32xf32> to vector<8xf32>
    %13 = vector.shape_cast %12 : vector<8xf32> to vector<8x1xf32>
    %cst_14 = arith.constant 3.200000e+01 : f32
    %14 = vector.broadcast %cst_14 : f32 to vector<8x1xf32>
    %15 = arith.divf %13, %14 : vector<8x1xf32>
    %16 = arith.mulf %8, %8 : vector<8x32xf32>
    %cst_15 = arith.constant dense<0.000000e+00> : vector<8xf32>
    %17 = vector.multi_reduction <add>, %16, %cst_15 [1] : vector<8x32xf32> to vector<8xf32>
    %18 = vector.shape_cast %17 : vector<8xf32> to vector<8x1xf32>
    %cst_16 = arith.constant 3.200000e+01 : f32
    %19 = vector.broadcast %cst_16 : f32 to vector<8x1xf32>
    %20 = arith.divf %18, %19 : vector<8x1xf32>
    %21 = arith.mulf %15, %15 : vector<8x1xf32>
    %22 = arith.subf %20, %21 : vector<8x1xf32>
    %23 = vector.broadcast %15 : vector<8x1xf32> to vector<8x32xf32>
    %24 = arith.subf %8, %23 : vector<8x32xf32>
    %cst_17 = arith.constant 9.99999974E-6 : f32
    %25 = vector.broadcast %cst_17 : f32 to vector<8x1xf32>
    %26 = arith.addf %22, %25 : vector<8x1xf32>
    %27 = math.rsqrt %26 : vector<8x1xf32>
    %28 = vector.broadcast %27 : vector<8x1xf32> to vector<8x32xf32>
    %29 = arith.mulf %24, %28 : vector<8x32xf32>
    %30 = vector.broadcast %10 : vector<1x32xf32> to vector<8x32xf32>
    %31 = arith.mulf %29, %30 : vector<8x32xf32>
    %32 = vector.broadcast %11 : vector<1x32xf32> to vector<8x32xf32>
    %33 = arith.addf %31, %32 : vector<8x32xf32>
    %c0_18 = arith.constant 0 : index
    %c0_19 = arith.constant 0 : index
    %34 = vector.load %arg7[%c0_18, %c0_19] : memref<32x96xbf16, #tpu.memory_space<vmem>>, vector<32x96xbf16>
    %35 = arith.truncf %33 : vector<8x32xf32> to vector<8x32xbf16>
    %cst_20 = arith.constant dense<0.000000e+00> : vector<8x96xf32>
    %36 = tpu.matmul %35, %34, %cst_20 {dimension_numbers = #tpu.dot_dimension_numbers<[1], [0], [0], [1], [0, 0, 1, 1], [], []>} : vector<8x32xbf16>, vector<32x96xbf16>, vector<8x96xf32> -> vector<8x96xf32>
    %c0_21 = arith.constant 0 : index
    %c0_22 = arith.constant 0 : index
    %37 = vector.load %arg8[%c0_21, %c0_22] : memref<1x96xf32, #tpu.memory_space<vmem>>, vector<1x96xf32>
    %38 = vector.broadcast %37 : vector<1x96xf32> to vector<8x96xf32>
    %39 = arith.addf %36, %38 : vector<8x96xf32>
    %40 = vector.extract_strided_slice %39 {offsets = [0, 0], sizes = [8, 32], strides = [1, 1]} : vector<8x96xf32> to vector<8x32xf32>
    %41 = vector.extract_strided_slice %39 {offsets = [0, 32], sizes = [8, 32], strides = [1, 1]} : vector<8x96xf32> to vector<8x32xf32>
    %42 = vector.extract_strided_slice %39 {offsets = [0, 64], sizes = [8, 32], strides = [1, 1]} : vector<8x96xf32> to vector<8x32xf32>
    %c0_23 = arith.constant 0 : index
    %c0_24 = arith.constant 0 : index
    %43 = vector.load %arg9[%c0_23, %c0_24] : memref<32x32xbf16, #tpu.memory_space<vmem>>, vector<32x32xbf16>
    %c0_25 = arith.constant 0 : index
    %c0_26 = arith.constant 0 : index
    %44 = vector.load %arg10[%c0_25, %c0_26] : memref<1x32xf32, #tpu.memory_space<vmem>>, vector<1x32xf32>
    %45 = tpu.iota {dimensions = array<i32: 1>} : vector<1x32xi32>
    %46 = arith.truncf %41 : vector<8x32xf32> to vector<8x32xbf16>
    %cst_27 = arith.constant 0.000000e+00 : f32
    %47 = vector.broadcast %cst_27 : f32 to vector<8x32xf32>
    %c0_i32 = arith.constant 0 : i32
    %48 = vector.broadcast %c0_i32 : i32 to vector<1x32xi32>
    %49 = arith.cmpi sge, %45, %48 : vector<1x32xi32>
    %c16_i32 = arith.constant 16 : i32
    %50 = vector.broadcast %c16_i32 : i32 to vector<1x32xi32>
    %51 = arith.cmpi slt, %45, %50 : vector<1x32xi32>
    %52 = arith.andi %49, %51 : vector<1x32xi1>
    %53 = arith.extui %52 : vector<1x32xi1> to vector<1x32xi32>
    %54 = arith.sitofp %53 : vector<1x32xi32> to vector<1x32xf32>
    %55 = vector.broadcast %54 : vector<1x32xf32> to vector<8x32xf32>
    %56 = arith.mulf %40, %55 : vector<8x32xf32>
    %57 = arith.truncf %56 : vector<8x32xf32> to vector<8x32xbf16>
    %cst_28 = arith.constant dense<0.000000e+00> : vector<8x8xf32>
    %58 = tpu.matmul %57, %46, %cst_28 {dimension_numbers = #tpu.dot_dimension_numbers<[1], [1], [0], [0], [0, 0, 1, 0], [], []>} : vector<8x32xbf16>, vector<8x32xbf16>, vector<8x8xf32> -> vector<8x8xf32>
    %cst_29 = arith.constant 2.500000e-01 : f32
    %59 = vector.broadcast %cst_29 : f32 to vector<8x8xf32>
    %60 = arith.mulf %58, %59 : vector<8x8xf32>
    %61 = arith.addf %60, %9 : vector<8x8xf32>
    %cst_30 = arith.constant dense<0xFF800000> : vector<8xf32>
    %62 = vector.multi_reduction <maximumf>, %61, %cst_30 [1] : vector<8x8xf32> to vector<8xf32>
    %63 = vector.shape_cast %62 : vector<8xf32> to vector<8x1xf32>
    %64 = vector.broadcast %63 : vector<8x1xf32> to vector<8x8xf32>
    %65 = arith.subf %61, %64 : vector<8x8xf32>
    %66 = math.exp %65 : vector<8x8xf32>
    %cst_31 = arith.constant dense<0.000000e+00> : vector<8xf32>
    %67 = vector.multi_reduction <add>, %66, %cst_31 [1] : vector<8x8xf32> to vector<8xf32>
    %68 = vector.shape_cast %67 : vector<8xf32> to vector<8x1xf32>
    %69 = tpu.reciprocal %68 {approx = true} : vector<8x1xf32> -> vector<8x1xf32>
    %70 = vector.broadcast %69 : vector<8x1xf32> to vector<8x8xf32>
    %71 = arith.mulf %66, %70 : vector<8x8xf32>
    %72 = vector.broadcast %54 : vector<1x32xf32> to vector<8x32xf32>
    %73 = arith.mulf %42, %72 : vector<8x32xf32>
    %74 = arith.truncf %73 : vector<8x32xf32> to vector<8x32xbf16>
    %75 = arith.truncf %71 : vector<8x8xf32> to vector<8x8xbf16>
    %cst_32 = arith.constant dense<0.000000e+00> : vector<8x32xf32>
    %76 = tpu.matmul %75, %74, %cst_32 {dimension_numbers = #tpu.dot_dimension_numbers<[1], [0], [0], [1], [0, 0, 1, 1], [], []>} : vector<8x8xbf16>, vector<8x32xbf16>, vector<8x32xf32> -> vector<8x32xf32>
    %77 = arith.addf %47, %76 : vector<8x32xf32>
    %c16_i32_33 = arith.constant 16 : i32
    %78 = vector.broadcast %c16_i32_33 : i32 to vector<1x32xi32>
    %79 = arith.cmpi sge, %45, %78 : vector<1x32xi32>
    %c32_i32 = arith.constant 32 : i32
    %80 = vector.broadcast %c32_i32 : i32 to vector<1x32xi32>
    %81 = arith.cmpi slt, %45, %80 : vector<1x32xi32>
    %82 = arith.andi %79, %81 : vector<1x32xi1>
    %83 = arith.extui %82 : vector<1x32xi1> to vector<1x32xi32>
    %84 = arith.sitofp %83 : vector<1x32xi32> to vector<1x32xf32>
    %85 = vector.broadcast %84 : vector<1x32xf32> to vector<8x32xf32>
    %86 = arith.mulf %40, %85 : vector<8x32xf32>
    %87 = arith.truncf %86 : vector<8x32xf32> to vector<8x32xbf16>
    %cst_34 = arith.constant dense<0.000000e+00> : vector<8x8xf32>
    %88 = tpu.matmul %87, %46, %cst_34 {dimension_numbers = #tpu.dot_dimension_numbers<[1], [1], [0], [0], [0, 0, 1, 0], [], []>} : vector<8x32xbf16>, vector<8x32xbf16>, vector<8x8xf32> -> vector<8x8xf32>
    %cst_35 = arith.constant 2.500000e-01 : f32
    %89 = vector.broadcast %cst_35 : f32 to vector<8x8xf32>
    %90 = arith.mulf %88, %89 : vector<8x8xf32>
    %91 = arith.addf %90, %9 : vector<8x8xf32>
    %cst_36 = arith.constant dense<0xFF800000> : vector<8xf32>
    %92 = vector.multi_reduction <maximumf>, %91, %cst_36 [1] : vector<8x8xf32> to vector<8xf32>
    %93 = vector.shape_cast %92 : vector<8xf32> to vector<8x1xf32>
    %94 = vector.broadcast %93 : vector<8x1xf32> to vector<8x8xf32>
    %95 = arith.subf %91, %94 : vector<8x8xf32>
    %96 = math.exp %95 : vector<8x8xf32>
    %cst_37 = arith.constant dense<0.000000e+00> : vector<8xf32>
    %97 = vector.multi_reduction <add>, %96, %cst_37 [1] : vector<8x8xf32> to vector<8xf32>
    %98 = vector.shape_cast %97 : vector<8xf32> to vector<8x1xf32>
    %99 = tpu.reciprocal %98 {approx = true} : vector<8x1xf32> -> vector<8x1xf32>
    %100 = vector.broadcast %99 : vector<8x1xf32> to vector<8x8xf32>
    %101 = arith.mulf %96, %100 : vector<8x8xf32>
    %102 = vector.broadcast %84 : vector<1x32xf32> to vector<8x32xf32>
    %103 = arith.mulf %42, %102 : vector<8x32xf32>
    %104 = arith.truncf %103 : vector<8x32xf32> to vector<8x32xbf16>
    %105 = arith.truncf %101 : vector<8x8xf32> to vector<8x8xbf16>
    %cst_38 = arith.constant dense<0.000000e+00> : vector<8x32xf32>
    %106 = tpu.matmul %105, %104, %cst_38 {dimension_numbers = #tpu.dot_dimension_numbers<[1], [0], [0], [1], [0, 0, 1, 1], [], []>} : vector<8x8xbf16>, vector<8x32xbf16>, vector<8x32xf32> -> vector<8x32xf32>
    %107 = arith.addf %77, %106 : vector<8x32xf32>
    %108 = arith.truncf %107 : vector<8x32xf32> to vector<8x32xbf16>
    %cst_39 = arith.constant dense<0.000000e+00> : vector<8x32xf32>
    %109 = tpu.matmul %108, %43, %cst_39 {dimension_numbers = #tpu.dot_dimension_numbers<[1], [0], [0], [1], [0, 0, 1, 1], [], []>} : vector<8x32xbf16>, vector<32x32xbf16>, vector<8x32xf32> -> vector<8x32xf32>
    %110 = vector.broadcast %44 : vector<1x32xf32> to vector<8x32xf32>
    %111 = arith.addf %109, %110 : vector<8x32xf32>
    %112 = arith.addf %8, %111 : vector<8x32xf32>
    %c0_40 = arith.constant 0 : index
    %c0_41 = arith.constant 0 : index
    %113 = vector.load %arg11[%c0_40, %c0_41] : memref<1x32xf32, #tpu.memory_space<vmem>>, vector<1x32xf32>
    %c0_42 = arith.constant 0 : index
    %c0_43 = arith.constant 0 : index
    %114 = vector.load %arg12[%c0_42, %c0_43] : memref<1x32xf32, #tpu.memory_space<vmem>>, vector<1x32xf32>
    %cst_44 = arith.constant dense<0.000000e+00> : vector<8xf32>
    %115 = vector.multi_reduction <add>, %112, %cst_44 [1] : vector<8x32xf32> to vector<8xf32>
    %116 = vector.shape_cast %115 : vector<8xf32> to vector<8x1xf32>
    %cst_45 = arith.constant 3.200000e+01 : f32
    %117 = vector.broadcast %cst_45 : f32 to vector<8x1xf32>
    %118 = arith.divf %116, %117 : vector<8x1xf32>
    %119 = arith.mulf %112, %112 : vector<8x32xf32>
    %cst_46 = arith.constant dense<0.000000e+00> : vector<8xf32>
    %120 = vector.multi_reduction <add>, %119, %cst_46 [1] : vector<8x32xf32> to vector<8xf32>
    %121 = vector.shape_cast %120 : vector<8xf32> to vector<8x1xf32>
    %cst_47 = arith.constant 3.200000e+01 : f32
    %122 = vector.broadcast %cst_47 : f32 to vector<8x1xf32>
    %123 = arith.divf %121, %122 : vector<8x1xf32>
    %124 = arith.mulf %118, %118 : vector<8x1xf32>
    %125 = arith.subf %123, %124 : vector<8x1xf32>
    %126 = vector.broadcast %118 : vector<8x1xf32> to vector<8x32xf32>
    %127 = arith.subf %112, %126 : vector<8x32xf32>
    %cst_48 = arith.constant 9.99999974E-6 : f32
    %128 = vector.broadcast %cst_48 : f32 to vector<8x1xf32>
    %129 = arith.addf %125, %128 : vector<8x1xf32>
    %130 = math.rsqrt %129 : vector<8x1xf32>
    %131 = vector.broadcast %130 : vector<8x1xf32> to vector<8x32xf32>
    %132 = arith.mulf %127, %131 : vector<8x32xf32>
    %133 = vector.broadcast %113 : vector<1x32xf32> to vector<8x32xf32>
    %134 = arith.mulf %132, %133 : vector<8x32xf32>
    %135 = vector.broadcast %114 : vector<1x32xf32> to vector<8x32xf32>
    %136 = arith.addf %134, %135 : vector<8x32xf32>
    %c0_49 = arith.constant 0 : index
    %c0_50 = arith.constant 0 : index
    %137 = vector.load %arg13[%c0_49, %c0_50] : memref<32x128xbf16, #tpu.memory_space<vmem>>, vector<32x128xbf16>
    %138 = arith.truncf %136 : vector<8x32xf32> to vector<8x32xbf16>
    %cst_51 = arith.constant dense<0.000000e+00> : vector<8x128xf32>
    %139 = tpu.matmul %138, %137, %cst_51 {dimension_numbers = #tpu.dot_dimension_numbers<[1], [0], [0], [1], [0, 0, 1, 1], [], []>} : vector<8x32xbf16>, vector<32x128xbf16>, vector<8x128xf32> -> vector<8x128xf32>
    %c0_52 = arith.constant 0 : index
    %c0_53 = arith.constant 0 : index
    %140 = vector.load %arg14[%c0_52, %c0_53] : memref<1x128xf32, #tpu.memory_space<vmem>>, vector<1x128xf32>
    %141 = vector.broadcast %140 : vector<1x128xf32> to vector<8x128xf32>
    %142 = arith.addf %139, %141 : vector<8x128xf32>
    %143 = arith.mulf %142, %142 : vector<8x128xf32>
    %144 = arith.mulf %142, %143 : vector<8x128xf32>
    %cst_54 = arith.constant 4.471500e-02 : f32
    %145 = vector.broadcast %cst_54 : f32 to vector<8x128xf32>
    %146 = arith.mulf %145, %144 : vector<8x128xf32>
    %147 = arith.addf %142, %146 : vector<8x128xf32>
    %cst_55 = arith.constant 0.797884583 : f32
    %148 = vector.broadcast %cst_55 : f32 to vector<8x128xf32>
    %149 = arith.mulf %148, %147 : vector<8x128xf32>
    %150 = math.tanh %149 : vector<8x128xf32>
    %cst_56 = arith.constant 1.000000e+00 : f32
    %151 = vector.broadcast %cst_56 : f32 to vector<8x128xf32>
    %152 = arith.addf %151, %150 : vector<8x128xf32>
    %cst_57 = arith.constant 5.000000e-01 : f32
    %153 = vector.broadcast %cst_57 : f32 to vector<8x128xf32>
    %154 = arith.mulf %153, %152 : vector<8x128xf32>
    %155 = arith.mulf %142, %154 : vector<8x128xf32>
    %c0_58 = arith.constant 0 : index
    %c0_59 = arith.constant 0 : index
    %156 = vector.load %arg15[%c0_58, %c0_59] : memref<128x32xbf16, #tpu.memory_space<vmem>>, vector<128x32xbf16>
    %157 = arith.truncf %155 : vector<8x128xf32> to vector<8x128xbf16>
    %cst_60 = arith.constant dense<0.000000e+00> : vector<8x32xf32>
    %158 = tpu.matmul %157, %156, %cst_60 {dimension_numbers = #tpu.dot_dimension_numbers<[1], [0], [0], [1], [0, 0, 1, 1], [], []>} : vector<8x128xbf16>, vector<128x32xbf16>, vector<8x32xf32> -> vector<8x32xf32>
    %159 = arith.addf %112, %158 : vector<8x32xf32>
    %c0_61 = arith.constant 0 : index
    %c0_62 = arith.constant 0 : index
    %160 = vector.load %arg16[%c0_61, %c0_62] : memref<1x32xf32, #tpu.memory_space<vmem>>, vector<1x32xf32>
    %161 = vector.broadcast %160 : vector<1x32xf32> to vector<8x32xf32>
    %162 = arith.addf %159, %161 : vector<8x32xf32>
    %c0_63 = arith.constant 0 : index
    %c0_64 = arith.constant 0 : index
    %163 = vector.load %arg17[%c0_63, %c0_64] : memref<1x32xf32, #tpu.memory_space<vmem>>, vector<1x32xf32>
    %c0_65 = arith.constant 0 : index
    %c0_66 = arith.constant 0 : index
    %164 = vector.load %arg18[%c0_65, %c0_66] : memref<1x32xf32, #tpu.memory_space<vmem>>, vector<1x32xf32>
    %cst_67 = arith.constant dense<0.000000e+00> : vector<8xf32>
    %165 = vector.multi_reduction <add>, %162, %cst_67 [1] : vector<8x32xf32> to vector<8xf32>
    %166 = vector.shape_cast %165 : vector<8xf32> to vector<8x1xf32>
    %cst_68 = arith.constant 3.200000e+01 : f32
    %167 = vector.broadcast %cst_68 : f32 to vector<8x1xf32>
    %168 = arith.divf %166, %167 : vector<8x1xf32>
    %169 = arith.mulf %162, %162 : vector<8x32xf32>
    %cst_69 = arith.constant dense<0.000000e+00> : vector<8xf32>
    %170 = vector.multi_reduction <add>, %169, %cst_69 [1] : vector<8x32xf32> to vector<8xf32>
    %171 = vector.shape_cast %170 : vector<8xf32> to vector<8x1xf32>
    %cst_70 = arith.constant 3.200000e+01 : f32
    %172 = vector.broadcast %cst_70 : f32 to vector<8x1xf32>
    %173 = arith.divf %171, %172 : vector<8x1xf32>
    %174 = arith.mulf %168, %168 : vector<8x1xf32>
    %175 = arith.subf %173, %174 : vector<8x1xf32>
    %176 = vector.broadcast %168 : vector<8x1xf32> to vector<8x32xf32>
    %177 = arith.subf %162, %176 : vector<8x32xf32>
    %cst_71 = arith.constant 9.99999974E-6 : f32
    %178 = vector.broadcast %cst_71 : f32 to vector<8x1xf32>
    %179 = arith.addf %175, %178 : vector<8x1xf32>
    %180 = math.rsqrt %179 : vector<8x1xf32>
    %181 = vector.broadcast %180 : vector<8x1xf32> to vector<8x32xf32>
    %182 = arith.mulf %177, %181 : vector<8x32xf32>
    %183 = vector.broadcast %163 : vector<1x32xf32> to vector<8x32xf32>
    %184 = arith.mulf %182, %183 : vector<8x32xf32>
    %185 = vector.broadcast %164 : vector<1x32xf32> to vector<8x32xf32>
    %186 = arith.addf %184, %185 : vector<8x32xf32>
    %c0_72 = arith.constant 0 : index
    %c0_73 = arith.constant 0 : index
    %187 = vector.load %arg19[%c0_72, %c0_73] : memref<16x32xf32, #tpu.memory_space<vmem>>, vector<16x32xf32>
    %c0_74 = arith.constant 0 : index
    %c0_75 = arith.constant 0 : index
    %188 = vector.load %arg24[%c0_74, %c0_75] : memref<1x32xf32, #tpu.memory_space<vmem>>, vector<1x32xf32>
    %c0_76 = arith.constant 0 : index
    %c0_77 = arith.constant 0 : index
    %189 = vector.load %arg25[%c0_76, %c0_77] : memref<1x32xf32, #tpu.memory_space<vmem>>, vector<1x32xf32>
    %cst_78 = arith.constant dense<0.000000e+00> : vector<16xf32>
    %190 = vector.multi_reduction <add>, %187, %cst_78 [1] : vector<16x32xf32> to vector<16xf32>
    %191 = vector.shape_cast %190 : vector<16xf32> to vector<16x1xf32>
    %cst_79 = arith.constant 3.200000e+01 : f32
    %192 = vector.broadcast %cst_79 : f32 to vector<16x1xf32>
    %193 = arith.divf %191, %192 : vector<16x1xf32>
    %194 = arith.mulf %187, %187 : vector<16x32xf32>
    %cst_80 = arith.constant dense<0.000000e+00> : vector<16xf32>
    %195 = vector.multi_reduction <add>, %194, %cst_80 [1] : vector<16x32xf32> to vector<16xf32>
    %196 = vector.shape_cast %195 : vector<16xf32> to vector<16x1xf32>
    %cst_81 = arith.constant 3.200000e+01 : f32
    %197 = vector.broadcast %cst_81 : f32 to vector<16x1xf32>
    %198 = arith.divf %196, %197 : vector<16x1xf32>
    %199 = arith.mulf %193, %193 : vector<16x1xf32>
    %200 = arith.subf %198, %199 : vector<16x1xf32>
    %201 = vector.broadcast %193 : vector<16x1xf32> to vector<16x32xf32>
    %202 = arith.subf %187, %201 : vector<16x32xf32>
    %cst_82 = arith.constant 9.99999974E-6 : f32
    %203 = vector.broadcast %cst_82 : f32 to vector<16x1xf32>
    %204 = arith.addf %200, %203 : vector<16x1xf32>
    %205 = math.rsqrt %204 : vector<16x1xf32>
    %206 = vector.broadcast %205 : vector<16x1xf32> to vector<16x32xf32>
    %207 = arith.mulf %202, %206 : vector<16x32xf32>
    %208 = vector.broadcast %188 : vector<1x32xf32> to vector<16x32xf32>
    %209 = arith.mulf %207, %208 : vector<16x32xf32>
    %210 = vector.broadcast %189 : vector<1x32xf32> to vector<16x32xf32>
    %211 = arith.addf %209, %210 : vector<16x32xf32>
    %c0_83 = arith.constant 0 : index
    %c0_84 = arith.constant 0 : index
    %212 = vector.load %arg26[%c0_83, %c0_84] : memref<32x96xbf16, #tpu.memory_space<vmem>>, vector<32x96xbf16>
    %213 = arith.truncf %211 : vector<16x32xf32> to vector<16x32xbf16>
    %cst_85 = arith.constant dense<0.000000e+00> : vector<16x96xf32>
    %214 = tpu.matmul %213, %212, %cst_85 {dimension_numbers = #tpu.dot_dimension_numbers<[1], [0], [0], [1], [0, 0, 1, 1], [], []>} : vector<16x32xbf16>, vector<32x96xbf16>, vector<16x96xf32> -> vector<16x96xf32>
    %c0_86 = arith.constant 0 : index
    %c0_87 = arith.constant 0 : index
    %215 = vector.load %arg27[%c0_86, %c0_87] : memref<1x96xf32, #tpu.memory_space<vmem>>, vector<1x96xf32>
    %216 = vector.broadcast %215 : vector<1x96xf32> to vector<16x96xf32>
    %217 = arith.addf %214, %216 : vector<16x96xf32>
    %218 = vector.extract_strided_slice %217 {offsets = [0, 0], sizes = [16, 32], strides = [1, 1]} : vector<16x96xf32> to vector<16x32xf32>
    %219 = vector.extract_strided_slice %217 {offsets = [0, 32], sizes = [16, 32], strides = [1, 1]} : vector<16x96xf32> to vector<16x32xf32>
    %220 = vector.extract_strided_slice %217 {offsets = [0, 64], sizes = [16, 32], strides = [1, 1]} : vector<16x96xf32> to vector<16x32xf32>
    %c0_88 = arith.constant 0 : index
    %c0_89 = arith.constant 0 : index
    %221 = vector.load %arg28[%c0_88, %c0_89] : memref<32x32xbf16, #tpu.memory_space<vmem>>, vector<32x32xbf16>
    %c0_90 = arith.constant 0 : index
    %c0_91 = arith.constant 0 : index
    %222 = vector.load %arg29[%c0_90, %c0_91] : memref<1x32xf32, #tpu.memory_space<vmem>>, vector<1x32xf32>
    %c0_92 = arith.constant 0 : index
    %c0_93 = arith.constant 0 : index
    %223 = vector.load %arg20[%c0_92, %c0_93] : memref<16x16xf32, #tpu.memory_space<vmem>>, vector<16x16xf32>
    %224 = tpu.iota {dimensions = array<i32: 1>} : vector<1x32xi32>
    %225 = arith.truncf %219 : vector<16x32xf32> to vector<16x32xbf16>
    %cst_94 = arith.constant 0.000000e+00 : f32
    %226 = vector.broadcast %cst_94 : f32 to vector<16x32xf32>
    %c0_i32_95 = arith.constant 0 : i32
    %227 = vector.broadcast %c0_i32_95 : i32 to vector<1x32xi32>
    %228 = arith.cmpi sge, %224, %227 : vector<1x32xi32>
    %c16_i32_96 = arith.constant 16 : i32
    %229 = vector.broadcast %c16_i32_96 : i32 to vector<1x32xi32>
    %230 = arith.cmpi slt, %224, %229 : vector<1x32xi32>
    %231 = arith.andi %228, %230 : vector<1x32xi1>
    %232 = arith.extui %231 : vector<1x32xi1> to vector<1x32xi32>
    %233 = arith.sitofp %232 : vector<1x32xi32> to vector<1x32xf32>
    %234 = vector.broadcast %233 : vector<1x32xf32> to vector<16x32xf32>
    %235 = arith.mulf %218, %234 : vector<16x32xf32>
    %236 = arith.truncf %235 : vector<16x32xf32> to vector<16x32xbf16>
    %cst_97 = arith.constant dense<0.000000e+00> : vector<16x16xf32>
    %237 = tpu.matmul %236, %225, %cst_97 {dimension_numbers = #tpu.dot_dimension_numbers<[1], [1], [0], [0], [0, 0, 1, 0], [], []>} : vector<16x32xbf16>, vector<16x32xbf16>, vector<16x16xf32> -> vector<16x16xf32>
    %cst_98 = arith.constant 2.500000e-01 : f32
    %238 = vector.broadcast %cst_98 : f32 to vector<16x16xf32>
    %239 = arith.mulf %237, %238 : vector<16x16xf32>
    %240 = arith.addf %239, %223 : vector<16x16xf32>
    %cst_99 = arith.constant dense<0xFF800000> : vector<16xf32>
    %241 = vector.multi_reduction <maximumf>, %240, %cst_99 [1] : vector<16x16xf32> to vector<16xf32>
    %242 = vector.shape_cast %241 : vector<16xf32> to vector<16x1xf32>
    %243 = vector.broadcast %242 : vector<16x1xf32> to vector<16x16xf32>
    %244 = arith.subf %240, %243 : vector<16x16xf32>
    %245 = math.exp %244 : vector<16x16xf32>
    %cst_100 = arith.constant dense<0.000000e+00> : vector<16xf32>
    %246 = vector.multi_reduction <add>, %245, %cst_100 [1] : vector<16x16xf32> to vector<16xf32>
    %247 = vector.shape_cast %246 : vector<16xf32> to vector<16x1xf32>
    %248 = tpu.reciprocal %247 {approx = true} : vector<16x1xf32> -> vector<16x1xf32>
    %249 = vector.broadcast %248 : vector<16x1xf32> to vector<16x16xf32>
    %250 = arith.mulf %245, %249 : vector<16x16xf32>
    %251 = vector.broadcast %233 : vector<1x32xf32> to vector<16x32xf32>
    %252 = arith.mulf %220, %251 : vector<16x32xf32>
    %253 = arith.truncf %252 : vector<16x32xf32> to vector<16x32xbf16>
    %254 = arith.truncf %250 : vector<16x16xf32> to vector<16x16xbf16>
    %cst_101 = arith.constant dense<0.000000e+00> : vector<16x32xf32>
    %255 = tpu.matmul %254, %253, %cst_101 {dimension_numbers = #tpu.dot_dimension_numbers<[1], [0], [0], [1], [0, 0, 1, 1], [], []>} : vector<16x16xbf16>, vector<16x32xbf16>, vector<16x32xf32> -> vector<16x32xf32>
    %256 = arith.addf %226, %255 : vector<16x32xf32>
    %c16_i32_102 = arith.constant 16 : i32
    %257 = vector.broadcast %c16_i32_102 : i32 to vector<1x32xi32>
    %258 = arith.cmpi sge, %224, %257 : vector<1x32xi32>
    %c32_i32_103 = arith.constant 32 : i32
    %259 = vector.broadcast %c32_i32_103 : i32 to vector<1x32xi32>
    %260 = arith.cmpi slt, %224, %259 : vector<1x32xi32>
    %261 = arith.andi %258, %260 : vector<1x32xi1>
    %262 = arith.extui %261 : vector<1x32xi1> to vector<1x32xi32>
    %263 = arith.sitofp %262 : vector<1x32xi32> to vector<1x32xf32>
    %264 = vector.broadcast %263 : vector<1x32xf32> to vector<16x32xf32>
    %265 = arith.mulf %218, %264 : vector<16x32xf32>
    %266 = arith.truncf %265 : vector<16x32xf32> to vector<16x32xbf16>
    %cst_104 = arith.constant dense<0.000000e+00> : vector<16x16xf32>
    %267 = tpu.matmul %266, %225, %cst_104 {dimension_numbers = #tpu.dot_dimension_numbers<[1], [1], [0], [0], [0, 0, 1, 0], [], []>} : vector<16x32xbf16>, vector<16x32xbf16>, vector<16x16xf32> -> vector<16x16xf32>
    %cst_105 = arith.constant 2.500000e-01 : f32
    %268 = vector.broadcast %cst_105 : f32 to vector<16x16xf32>
    %269 = arith.mulf %267, %268 : vector<16x16xf32>
    %270 = arith.addf %269, %223 : vector<16x16xf32>
    %cst_106 = arith.constant dense<0xFF800000> : vector<16xf32>
    %271 = vector.multi_reduction <maximumf>, %270, %cst_106 [1] : vector<16x16xf32> to vector<16xf32>
    %272 = vector.shape_cast %271 : vector<16xf32> to vector<16x1xf32>
    %273 = vector.broadcast %272 : vector<16x1xf32> to vector<16x16xf32>
    %274 = arith.subf %270, %273 : vector<16x16xf32>
    %275 = math.exp %274 : vector<16x16xf32>
    %cst_107 = arith.constant dense<0.000000e+00> : vector<16xf32>
    %276 = vector.multi_reduction <add>, %275, %cst_107 [1] : vector<16x16xf32> to vector<16xf32>
    %277 = vector.shape_cast %276 : vector<16xf32> to vector<16x1xf32>
    %278 = tpu.reciprocal %277 {approx = true} : vector<16x1xf32> -> vector<16x1xf32>
    %279 = vector.broadcast %278 : vector<16x1xf32> to vector<16x16xf32>
    %280 = arith.mulf %275, %279 : vector<16x16xf32>
    %281 = vector.broadcast %263 : vector<1x32xf32> to vector<16x32xf32>
    %282 = arith.mulf %220, %281 : vector<16x32xf32>
    %283 = arith.truncf %282 : vector<16x32xf32> to vector<16x32xbf16>
    %284 = arith.truncf %280 : vector<16x16xf32> to vector<16x16xbf16>
    %cst_108 = arith.constant dense<0.000000e+00> : vector<16x32xf32>
    %285 = tpu.matmul %284, %283, %cst_108 {dimension_numbers = #tpu.dot_dimension_numbers<[1], [0], [0], [1], [0, 0, 1, 1], [], []>} : vector<16x16xbf16>, vector<16x32xbf16>, vector<16x32xf32> -> vector<16x32xf32>
    %286 = arith.addf %256, %285 : vector<16x32xf32>
    %287 = arith.truncf %286 : vector<16x32xf32> to vector<16x32xbf16>
    %cst_109 = arith.constant dense<0.000000e+00> : vector<16x32xf32>
    %288 = tpu.matmul %287, %221, %cst_109 {dimension_numbers = #tpu.dot_dimension_numbers<[1], [0], [0], [1], [0, 0, 1, 1], [], []>} : vector<16x32xbf16>, vector<32x32xbf16>, vector<16x32xf32> -> vector<16x32xf32>
    %289 = vector.broadcast %222 : vector<1x32xf32> to vector<16x32xf32>
    %290 = arith.addf %288, %289 : vector<16x32xf32>
    %291 = arith.addf %187, %290 : vector<16x32xf32>
    %c0_110 = arith.constant 0 : index
    %c0_111 = arith.constant 0 : index
    %292 = vector.load %arg30[%c0_110, %c0_111] : memref<1x32xf32, #tpu.memory_space<vmem>>, vector<1x32xf32>
    %c0_112 = arith.constant 0 : index
    %c0_113 = arith.constant 0 : index
    %293 = vector.load %arg31[%c0_112, %c0_113] : memref<1x32xf32, #tpu.memory_space<vmem>>, vector<1x32xf32>
    %cst_114 = arith.constant dense<0.000000e+00> : vector<16xf32>
    %294 = vector.multi_reduction <add>, %291, %cst_114 [1] : vector<16x32xf32> to vector<16xf32>
    %295 = vector.shape_cast %294 : vector<16xf32> to vector<16x1xf32>
    %cst_115 = arith.constant 3.200000e+01 : f32
    %296 = vector.broadcast %cst_115 : f32 to vector<16x1xf32>
    %297 = arith.divf %295, %296 : vector<16x1xf32>
    %298 = arith.mulf %291, %291 : vector<16x32xf32>
    %cst_116 = arith.constant dense<0.000000e+00> : vector<16xf32>
    %299 = vector.multi_reduction <add>, %298, %cst_116 [1] : vector<16x32xf32> to vector<16xf32>
    %300 = vector.shape_cast %299 : vector<16xf32> to vector<16x1xf32>
    %cst_117 = arith.constant 3.200000e+01 : f32
    %301 = vector.broadcast %cst_117 : f32 to vector<16x1xf32>
    %302 = arith.divf %300, %301 : vector<16x1xf32>
    %303 = arith.mulf %297, %297 : vector<16x1xf32>
    %304 = arith.subf %302, %303 : vector<16x1xf32>
    %305 = vector.broadcast %297 : vector<16x1xf32> to vector<16x32xf32>
    %306 = arith.subf %291, %305 : vector<16x32xf32>
    %cst_118 = arith.constant 9.99999974E-6 : f32
    %307 = vector.broadcast %cst_118 : f32 to vector<16x1xf32>
    %308 = arith.addf %304, %307 : vector<16x1xf32>
    %309 = math.rsqrt %308 : vector<16x1xf32>
    %310 = vector.broadcast %309 : vector<16x1xf32> to vector<16x32xf32>
    %311 = arith.mulf %306, %310 : vector<16x32xf32>
    %312 = vector.broadcast %292 : vector<1x32xf32> to vector<16x32xf32>
    %313 = arith.mulf %311, %312 : vector<16x32xf32>
    %314 = vector.broadcast %293 : vector<1x32xf32> to vector<16x32xf32>
    %315 = arith.addf %313, %314 : vector<16x32xf32>
    %c0_119 = arith.constant 0 : index
    %c0_120 = arith.constant 0 : index
    %316 = vector.load %arg32[%c0_119, %c0_120] : memref<32x32xbf16, #tpu.memory_space<vmem>>, vector<32x32xbf16>
    %317 = arith.truncf %315 : vector<16x32xf32> to vector<16x32xbf16>
    %cst_121 = arith.constant dense<0.000000e+00> : vector<16x32xf32>
    %318 = tpu.matmul %317, %316, %cst_121 {dimension_numbers = #tpu.dot_dimension_numbers<[1], [0], [0], [1], [0, 0, 1, 1], [], []>} : vector<16x32xbf16>, vector<32x32xbf16>, vector<16x32xf32> -> vector<16x32xf32>
    %c0_122 = arith.constant 0 : index
    %c0_123 = arith.constant 0 : index
    %319 = vector.load %arg33[%c0_122, %c0_123] : memref<1x32xf32, #tpu.memory_space<vmem>>, vector<1x32xf32>
    %320 = vector.broadcast %319 : vector<1x32xf32> to vector<16x32xf32>
    %321 = arith.addf %318, %320 : vector<16x32xf32>
    %c0_124 = arith.constant 0 : index
    %c0_125 = arith.constant 0 : index
    %322 = vector.load %arg34[%c0_124, %c0_125] : memref<32x64xbf16, #tpu.memory_space<vmem>>, vector<32x64xbf16>
    %323 = arith.truncf %186 : vector<8x32xf32> to vector<8x32xbf16>
    %cst_126 = arith.constant dense<0.000000e+00> : vector<8x64xf32>
    %324 = tpu.matmul %323, %322, %cst_126 {dimension_numbers = #tpu.dot_dimension_numbers<[1], [0], [0], [1], [0, 0, 1, 1], [], []>} : vector<8x32xbf16>, vector<32x64xbf16>, vector<8x64xf32> -> vector<8x64xf32>
    %c0_127 = arith.constant 0 : index
    %c0_128 = arith.constant 0 : index
    %325 = vector.load %arg35[%c0_127, %c0_128] : memref<1x64xf32, #tpu.memory_space<vmem>>, vector<1x64xf32>
    %326 = vector.broadcast %325 : vector<1x64xf32> to vector<8x64xf32>
    %327 = arith.addf %324, %326 : vector<8x64xf32>
    %328 = vector.extract_strided_slice %327 {offsets = [0, 0], sizes = [8, 32], strides = [1, 1]} : vector<8x64xf32> to vector<8x32xf32>
    %329 = vector.extract_strided_slice %327 {offsets = [0, 32], sizes = [8, 32], strides = [1, 1]} : vector<8x64xf32> to vector<8x32xf32>
    %c0_129 = arith.constant 0 : index
    %c0_130 = arith.constant 0 : index
    %330 = vector.load %arg36[%c0_129, %c0_130] : memref<32x32xbf16, #tpu.memory_space<vmem>>, vector<32x32xbf16>
    %c0_131 = arith.constant 0 : index
    %c0_132 = arith.constant 0 : index
    %331 = vector.load %arg37[%c0_131, %c0_132] : memref<1x32xf32, #tpu.memory_space<vmem>>, vector<1x32xf32>
    %c0_133 = arith.constant 0 : index
    %c0_134 = arith.constant 0 : index
    %332 = vector.load %arg21[%c0_133, %c0_134] : memref<16x8xf32, #tpu.memory_space<vmem>>, vector<16x8xf32>
    %333 = tpu.iota {dimensions = array<i32: 1>} : vector<1x32xi32>
    %334 = arith.truncf %328 : vector<8x32xf32> to vector<8x32xbf16>
    %cst_135 = arith.constant 0.000000e+00 : f32
    %335 = vector.broadcast %cst_135 : f32 to vector<16x32xf32>
    %c0_i32_136 = arith.constant 0 : i32
    %336 = vector.broadcast %c0_i32_136 : i32 to vector<1x32xi32>
    %337 = arith.cmpi sge, %333, %336 : vector<1x32xi32>
    %c16_i32_137 = arith.constant 16 : i32
    %338 = vector.broadcast %c16_i32_137 : i32 to vector<1x32xi32>
    %339 = arith.cmpi slt, %333, %338 : vector<1x32xi32>
    %340 = arith.andi %337, %339 : vector<1x32xi1>
    %341 = arith.extui %340 : vector<1x32xi1> to vector<1x32xi32>
    %342 = arith.sitofp %341 : vector<1x32xi32> to vector<1x32xf32>
    %343 = vector.broadcast %342 : vector<1x32xf32> to vector<16x32xf32>
    %344 = arith.mulf %321, %343 : vector<16x32xf32>
    %345 = arith.truncf %344 : vector<16x32xf32> to vector<16x32xbf16>
    %cst_138 = arith.constant dense<0.000000e+00> : vector<16x8xf32>
    %346 = tpu.matmul %345, %334, %cst_138 {dimension_numbers = #tpu.dot_dimension_numbers<[1], [1], [0], [0], [0, 0, 1, 0], [], []>} : vector<16x32xbf16>, vector<8x32xbf16>, vector<16x8xf32> -> vector<16x8xf32>
    %cst_139 = arith.constant 2.500000e-01 : f32
    %347 = vector.broadcast %cst_139 : f32 to vector<16x8xf32>
    %348 = arith.mulf %346, %347 : vector<16x8xf32>
    %349 = arith.addf %348, %332 : vector<16x8xf32>
    %cst_140 = arith.constant dense<0xFF800000> : vector<16xf32>
    %350 = vector.multi_reduction <maximumf>, %349, %cst_140 [1] : vector<16x8xf32> to vector<16xf32>
    %351 = vector.shape_cast %350 : vector<16xf32> to vector<16x1xf32>
    %352 = vector.broadcast %351 : vector<16x1xf32> to vector<16x8xf32>
    %353 = arith.subf %349, %352 : vector<16x8xf32>
    %354 = math.exp %353 : vector<16x8xf32>
    %cst_141 = arith.constant dense<0.000000e+00> : vector<16xf32>
    %355 = vector.multi_reduction <add>, %354, %cst_141 [1] : vector<16x8xf32> to vector<16xf32>
    %356 = vector.shape_cast %355 : vector<16xf32> to vector<16x1xf32>
    %357 = tpu.reciprocal %356 {approx = true} : vector<16x1xf32> -> vector<16x1xf32>
    %358 = vector.broadcast %357 : vector<16x1xf32> to vector<16x8xf32>
    %359 = arith.mulf %354, %358 : vector<16x8xf32>
    %360 = vector.broadcast %342 : vector<1x32xf32> to vector<8x32xf32>
    %361 = arith.mulf %329, %360 : vector<8x32xf32>
    %362 = arith.truncf %361 : vector<8x32xf32> to vector<8x32xbf16>
    %363 = arith.truncf %359 : vector<16x8xf32> to vector<16x8xbf16>
    %cst_142 = arith.constant dense<0.000000e+00> : vector<16x32xf32>
    %364 = tpu.matmul %363, %362, %cst_142 {dimension_numbers = #tpu.dot_dimension_numbers<[1], [0], [0], [1], [0, 0, 1, 1], [], []>} : vector<16x8xbf16>, vector<8x32xbf16>, vector<16x32xf32> -> vector<16x32xf32>
    %365 = arith.addf %335, %364 : vector<16x32xf32>
    %c16_i32_143 = arith.constant 16 : i32
    %366 = vector.broadcast %c16_i32_143 : i32 to vector<1x32xi32>
    %367 = arith.cmpi sge, %333, %366 : vector<1x32xi32>
    %c32_i32_144 = arith.constant 32 : i32
    %368 = vector.broadcast %c32_i32_144 : i32 to vector<1x32xi32>
    %369 = arith.cmpi slt, %333, %368 : vector<1x32xi32>
    %370 = arith.andi %367, %369 : vector<1x32xi1>
    %371 = arith.extui %370 : vector<1x32xi1> to vector<1x32xi32>
    %372 = arith.sitofp %371 : vector<1x32xi32> to vector<1x32xf32>
    %373 = vector.broadcast %372 : vector<1x32xf32> to vector<16x32xf32>
    %374 = arith.mulf %321, %373 : vector<16x32xf32>
    %375 = arith.truncf %374 : vector<16x32xf32> to vector<16x32xbf16>
    %cst_145 = arith.constant dense<0.000000e+00> : vector<16x8xf32>
    %376 = tpu.matmul %375, %334, %cst_145 {dimension_numbers = #tpu.dot_dimension_numbers<[1], [1], [0], [0], [0, 0, 1, 0], [], []>} : vector<16x32xbf16>, vector<8x32xbf16>, vector<16x8xf32> -> vector<16x8xf32>
    %cst_146 = arith.constant 2.500000e-01 : f32
    %377 = vector.broadcast %cst_146 : f32 to vector<16x8xf32>
    %378 = arith.mulf %376, %377 : vector<16x8xf32>
    %379 = arith.addf %378, %332 : vector<16x8xf32>
    %cst_147 = arith.constant dense<0xFF800000> : vector<16xf32>
    %380 = vector.multi_reduction <maximumf>, %379, %cst_147 [1] : vector<16x8xf32> to vector<16xf32>
    %381 = vector.shape_cast %380 : vector<16xf32> to vector<16x1xf32>
    %382 = vector.broadcast %381 : vector<16x1xf32> to vector<16x8xf32>
    %383 = arith.subf %379, %382 : vector<16x8xf32>
    %384 = math.exp %383 : vector<16x8xf32>
    %cst_148 = arith.constant dense<0.000000e+00> : vector<16xf32>
    %385 = vector.multi_reduction <add>, %384, %cst_148 [1] : vector<16x8xf32> to vector<16xf32>
    %386 = vector.shape_cast %385 : vector<16xf32> to vector<16x1xf32>
    %387 = tpu.reciprocal %386 {approx = true} : vector<16x1xf32> -> vector<16x1xf32>
    %388 = vector.broadcast %387 : vector<16x1xf32> to vector<16x8xf32>
    %389 = arith.mulf %384, %388 : vector<16x8xf32>
    %390 = vector.broadcast %372 : vector<1x32xf32> to vector<8x32xf32>
    %391 = arith.mulf %329, %390 : vector<8x32xf32>
    %392 = arith.truncf %391 : vector<8x32xf32> to vector<8x32xbf16>
    %393 = arith.truncf %389 : vector<16x8xf32> to vector<16x8xbf16>
    %cst_149 = arith.constant dense<0.000000e+00> : vector<16x32xf32>
    %394 = tpu.matmul %393, %392, %cst_149 {dimension_numbers = #tpu.dot_dimension_numbers<[1], [0], [0], [1], [0, 0, 1, 1], [], []>} : vector<16x8xbf16>, vector<8x32xbf16>, vector<16x32xf32> -> vector<16x32xf32>
    %395 = arith.addf %365, %394 : vector<16x32xf32>
    %396 = arith.truncf %395 : vector<16x32xf32> to vector<16x32xbf16>
    %cst_150 = arith.constant dense<0.000000e+00> : vector<16x32xf32>
    %397 = tpu.matmul %396, %330, %cst_150 {dimension_numbers = #tpu.dot_dimension_numbers<[1], [0], [0], [1], [0, 0, 1, 1], [], []>} : vector<16x32xbf16>, vector<32x32xbf16>, vector<16x32xf32> -> vector<16x32xf32>
    %398 = vector.broadcast %331 : vector<1x32xf32> to vector<16x32xf32>
    %399 = arith.addf %397, %398 : vector<16x32xf32>
    %400 = arith.addf %291, %399 : vector<16x32xf32>
    %c0_151 = arith.constant 0 : index
    %c0_152 = arith.constant 0 : index
    %401 = vector.load %arg38[%c0_151, %c0_152] : memref<1x32xf32, #tpu.memory_space<vmem>>, vector<1x32xf32>
    %c0_153 = arith.constant 0 : index
    %c0_154 = arith.constant 0 : index
    %402 = vector.load %arg39[%c0_153, %c0_154] : memref<1x32xf32, #tpu.memory_space<vmem>>, vector<1x32xf32>
    %cst_155 = arith.constant dense<0.000000e+00> : vector<16xf32>
    %403 = vector.multi_reduction <add>, %400, %cst_155 [1] : vector<16x32xf32> to vector<16xf32>
    %404 = vector.shape_cast %403 : vector<16xf32> to vector<16x1xf32>
    %cst_156 = arith.constant 3.200000e+01 : f32
    %405 = vector.broadcast %cst_156 : f32 to vector<16x1xf32>
    %406 = arith.divf %404, %405 : vector<16x1xf32>
    %407 = arith.mulf %400, %400 : vector<16x32xf32>
    %cst_157 = arith.constant dense<0.000000e+00> : vector<16xf32>
    %408 = vector.multi_reduction <add>, %407, %cst_157 [1] : vector<16x32xf32> to vector<16xf32>
    %409 = vector.shape_cast %408 : vector<16xf32> to vector<16x1xf32>
    %cst_158 = arith.constant 3.200000e+01 : f32
    %410 = vector.broadcast %cst_158 : f32 to vector<16x1xf32>
    %411 = arith.divf %409, %410 : vector<16x1xf32>
    %412 = arith.mulf %406, %406 : vector<16x1xf32>
    %413 = arith.subf %411, %412 : vector<16x1xf32>
    %414 = vector.broadcast %406 : vector<16x1xf32> to vector<16x32xf32>
    %415 = arith.subf %400, %414 : vector<16x32xf32>
    %cst_159 = arith.constant 9.99999974E-6 : f32
    %416 = vector.broadcast %cst_159 : f32 to vector<16x1xf32>
    %417 = arith.addf %413, %416 : vector<16x1xf32>
    %418 = math.rsqrt %417 : vector<16x1xf32>
    %419 = vector.broadcast %418 : vector<16x1xf32> to vector<16x32xf32>
    %420 = arith.mulf %415, %419 : vector<16x32xf32>
    %421 = vector.broadcast %401 : vector<1x32xf32> to vector<16x32xf32>
    %422 = arith.mulf %420, %421 : vector<16x32xf32>
    %423 = vector.broadcast %402 : vector<1x32xf32> to vector<16x32xf32>
    %424 = arith.addf %422, %423 : vector<16x32xf32>
    %c0_160 = arith.constant 0 : index
    %c0_161 = arith.constant 0 : index
    %425 = vector.load %arg40[%c0_160, %c0_161] : memref<32x128xbf16, #tpu.memory_space<vmem>>, vector<32x128xbf16>
    %426 = arith.truncf %424 : vector<16x32xf32> to vector<16x32xbf16>
    %cst_162 = arith.constant dense<0.000000e+00> : vector<16x128xf32>
    %427 = tpu.matmul %426, %425, %cst_162 {dimension_numbers = #tpu.dot_dimension_numbers<[1], [0], [0], [1], [0, 0, 1, 1], [], []>} : vector<16x32xbf16>, vector<32x128xbf16>, vector<16x128xf32> -> vector<16x128xf32>
    %c0_163 = arith.constant 0 : index
    %c0_164 = arith.constant 0 : index
    %428 = vector.load %arg41[%c0_163, %c0_164] : memref<1x128xf32, #tpu.memory_space<vmem>>, vector<1x128xf32>
    %429 = vector.broadcast %428 : vector<1x128xf32> to vector<16x128xf32>
    %430 = arith.addf %427, %429 : vector<16x128xf32>
    %431 = arith.mulf %430, %430 : vector<16x128xf32>
    %432 = arith.mulf %430, %431 : vector<16x128xf32>
    %cst_165 = arith.constant 4.471500e-02 : f32
    %433 = vector.broadcast %cst_165 : f32 to vector<16x128xf32>
    %434 = arith.mulf %433, %432 : vector<16x128xf32>
    %435 = arith.addf %430, %434 : vector<16x128xf32>
    %cst_166 = arith.constant 0.797884583 : f32
    %436 = vector.broadcast %cst_166 : f32 to vector<16x128xf32>
    %437 = arith.mulf %436, %435 : vector<16x128xf32>
    %438 = math.tanh %437 : vector<16x128xf32>
    %cst_167 = arith.constant 1.000000e+00 : f32
    %439 = vector.broadcast %cst_167 : f32 to vector<16x128xf32>
    %440 = arith.addf %439, %438 : vector<16x128xf32>
    %cst_168 = arith.constant 5.000000e-01 : f32
    %441 = vector.broadcast %cst_168 : f32 to vector<16x128xf32>
    %442 = arith.mulf %441, %440 : vector<16x128xf32>
    %443 = arith.mulf %430, %442 : vector<16x128xf32>
    %c0_169 = arith.constant 0 : index
    %c0_170 = arith.constant 0 : index
    %444 = vector.load %arg42[%c0_169, %c0_170] : memref<128x32xbf16, #tpu.memory_space<vmem>>, vector<128x32xbf16>
    %445 = arith.truncf %443 : vector<16x128xf32> to vector<16x128xbf16>
    %cst_171 = arith.constant dense<0.000000e+00> : vector<16x32xf32>
    %446 = tpu.matmul %445, %444, %cst_171 {dimension_numbers = #tpu.dot_dimension_numbers<[1], [0], [0], [1], [0, 0, 1, 1], [], []>} : vector<16x128xbf16>, vector<128x32xbf16>, vector<16x32xf32> -> vector<16x32xf32>
    %447 = arith.addf %400, %446 : vector<16x32xf32>
    %c0_172 = arith.constant 0 : index
    %c0_173 = arith.constant 0 : index
    %448 = vector.load %arg43[%c0_172, %c0_173] : memref<1x32xf32, #tpu.memory_space<vmem>>, vector<1x32xf32>
    %449 = vector.broadcast %448 : vector<1x32xf32> to vector<16x32xf32>
    %450 = arith.addf %447, %449 : vector<16x32xf32>
    %c0_174 = arith.constant 0 : index
    %c0_175 = arith.constant 0 : index
    %451 = vector.load %arg44[%c0_174, %c0_175] : memref<1x32xf32, #tpu.memory_space<vmem>>, vector<1x32xf32>
    %c0_176 = arith.constant 0 : index
    %c0_177 = arith.constant 0 : index
    %452 = vector.load %arg45[%c0_176, %c0_177] : memref<1x32xf32, #tpu.memory_space<vmem>>, vector<1x32xf32>
    %cst_178 = arith.constant dense<0.000000e+00> : vector<16xf32>
    %453 = vector.multi_reduction <add>, %450, %cst_178 [1] : vector<16x32xf32> to vector<16xf32>
    %454 = vector.shape_cast %453 : vector<16xf32> to vector<16x1xf32>
    %cst_179 = arith.constant 3.200000e+01 : f32
    %455 = vector.broadcast %cst_179 : f32 to vector<16x1xf32>
    %456 = arith.divf %454, %455 : vector<16x1xf32>
    %457 = arith.mulf %450, %450 : vector<16x32xf32>
    %cst_180 = arith.constant dense<0.000000e+00> : vector<16xf32>
    %458 = vector.multi_reduction <add>, %457, %cst_180 [1] : vector<16x32xf32> to vector<16xf32>
    %459 = vector.shape_cast %458 : vector<16xf32> to vector<16x1xf32>
    %cst_181 = arith.constant 3.200000e+01 : f32
    %460 = vector.broadcast %cst_181 : f32 to vector<16x1xf32>
    %461 = arith.divf %459, %460 : vector<16x1xf32>
    %462 = arith.mulf %456, %456 : vector<16x1xf32>
    %463 = arith.subf %461, %462 : vector<16x1xf32>
    %464 = vector.broadcast %456 : vector<16x1xf32> to vector<16x32xf32>
    %465 = arith.subf %450, %464 : vector<16x32xf32>
    %cst_182 = arith.constant 9.99999974E-6 : f32
    %466 = vector.broadcast %cst_182 : f32 to vector<16x1xf32>
    %467 = arith.addf %463, %466 : vector<16x1xf32>
    %468 = math.rsqrt %467 : vector<16x1xf32>
    %469 = vector.broadcast %468 : vector<16x1xf32> to vector<16x32xf32>
    %470 = arith.mulf %465, %469 : vector<16x32xf32>
    %471 = vector.broadcast %451 : vector<1x32xf32> to vector<16x32xf32>
    %472 = arith.mulf %470, %471 : vector<16x32xf32>
    %473 = vector.broadcast %452 : vector<1x32xf32> to vector<16x32xf32>
    %474 = arith.addf %472, %473 : vector<16x32xf32>
    %c0_183 = arith.constant 0 : index
    %c0_184 = arith.constant 0 : index
    %475 = vector.load %arg46[%c0_183, %c0_184] : memref<32x128xbf16, #tpu.memory_space<vmem>>, vector<32x128xbf16>
    %476 = arith.truncf %474 : vector<16x32xf32> to vector<16x32xbf16>
    %cst_185 = arith.constant dense<0.000000e+00> : vector<16x128xf32>
    %477 = tpu.matmul %476, %475, %cst_185 {dimension_numbers = #tpu.dot_dimension_numbers<[1], [0], [0], [1], [0, 0, 1, 1], [], []>} : vector<16x32xbf16>, vector<32x128xbf16>, vector<16x128xf32> -> vector<16x128xf32>
    %c0_186 = arith.constant 0 : index
    %c0_187 = arith.constant 0 : index
    %478 = vector.load %arg47[%c0_186, %c0_187] : memref<1x128xf32, #tpu.memory_space<vmem>>, vector<1x128xf32>
    %479 = vector.broadcast %478 : vector<1x128xf32> to vector<16x128xf32>
    %480 = arith.addf %477, %479 : vector<16x128xf32>
    %cst_188 = arith.constant dense<0xFF800000> : vector<16xf32>
    %481 = vector.multi_reduction <maximumf>, %480, %cst_188 [1] : vector<16x128xf32> to vector<16xf32>
    %482 = vector.shape_cast %481 : vector<16xf32> to vector<16x1xf32>
    %483 = vector.broadcast %482 : vector<16x1xf32> to vector<16x128xf32>
    %484 = arith.subf %480, %483 : vector<16x128xf32>
    %485 = math.exp %484 : vector<16x128xf32>
    %cst_189 = arith.constant dense<0.000000e+00> : vector<16xf32>
    %486 = vector.multi_reduction <add>, %485, %cst_189 [1] : vector<16x128xf32> to vector<16xf32>
    %487 = vector.shape_cast %486 : vector<16xf32> to vector<16x1xf32>
    %488 = math.log %487 : vector<16x1xf32>
    %489 = arith.addf %482, %488 : vector<16x1xf32>
    %490 = tpu.iota {dimensions = array<i32: 1>} : vector<16x128xi32>
    %c0_190 = arith.constant 0 : index
    %c0_191 = arith.constant 0 : index
    %491 = vector.load %arg22[%c0_190, %c0_191] : memref<16x1xi32, #tpu.memory_space<vmem>>, vector<16x1xi32>
    %492 = vector.broadcast %491 : vector<16x1xi32> to vector<16x128xi32>
    %493 = arith.cmpi eq, %490, %492 : vector<16x128xi32>
    %cst_192 = arith.constant 0.000000e+00 : f32
    %494 = vector.broadcast %cst_192 : f32 to vector<16x128xf32>
    %495 = arith.select %493, %480, %494 : vector<16x128xi1>, vector<16x128xf32>
    %cst_193 = arith.constant dense<0.000000e+00> : vector<16xf32>
    %496 = vector.multi_reduction <add>, %495, %cst_193 [1] : vector<16x128xf32> to vector<16xf32>
    %497 = vector.shape_cast %496 : vector<16xf32> to vector<16x1xf32>
    %c0_194 = arith.constant 0 : index
    %c0_195 = arith.constant 0 : index
    %498 = vector.load %arg23[%c0_194, %c0_195] : memref<16x1xf32, #tpu.memory_space<vmem>>, vector<16x1xf32>
    %499 = arith.subf %489, %497 : vector<16x1xf32>
    %500 = arith.mulf %499, %498 : vector<16x1xf32>
    %501 = vector.shape_cast %500 : vector<16x1xf32> to vector<1x16x1xf32>
    %cst_196 = arith.constant dense<0.000000e+00> : vector<1xf32>
    %502 = vector.multi_reduction <add>, %501, %cst_196 [1, 2] : vector<1x16x1xf32> to vector<1xf32>
    %503 = vector.shape_cast %502 : vector<1xf32> to vector<1x1x1xf32>
    %504 = vector.extract %503[0, 0, 0] : f32 from vector<1x1x1xf32>
    %505 = vector.broadcast %504 : f32 to vector<1x1xf32>
    %506 = vector.shape_cast %498 : vector<16x1xf32> to vector<1x16x1xf32>
    %cst_197 = arith.constant dense<0.000000e+00> : vector<1xf32>
    %507 = vector.multi_reduction <add>, %506, %cst_197 [1, 2] : vector<1x16x1xf32> to vector<1xf32>
    %508 = vector.shape_cast %507 : vector<1xf32> to vector<1x1x1xf32>
    %509 = vector.extract %508[0, 0, 0] : f32 from vector<1x1x1xf32>
    %510 = vector.broadcast %509 : f32 to vector<1x1xf32>
    %cst_198 = arith.constant 1.000000e+00 : f32
    %511 = vector.broadcast %cst_198 : f32 to vector<1x1xf32>
    %512 = arith.maximumf %510, %511 : vector<1x1xf32>
    %513 = arith.divf %505, %512 : vector<1x1xf32>
    %c0_199 = arith.constant 0 : index
    %c0_200 = arith.constant 0 : index
    %514 = vector.load %arg48[%c0_199, %c0_200] : memref<1x1xf32, #tpu.memory_space<vmem>>, vector<1x1xf32>
    tpu.vector_store %arg48[%c0_199, %c0_200], %513 {strides = array<i32>} : memref<1x1xf32, #tpu.memory_space<vmem>>, vector<1x1xf32>,
    return
  }
}

</mosaic_0001>

<bundles_post_ra>
// kernel: mul.17
= control target key start
LH: loop header
LB: loop body
LE: loop exit
PB: predicated region body
PF: predicated region fallthrough
CT: control target
= control target key end

     0   :  { %vm7_vm0 = vcmask 64512   ;;  %vm13_vm1 = vcmask 130112   ;;  %s39_s0 = inlined_call_operand.vmem [shape: f32[2,8], index: 0, kind: input, shape index: {}]   ;;  %s40_s1 = inlined_call_operand.vmem [shape: f32[16], index: 1, kind: output, shape index: {}]  }
   0x1   :  { %v4_v0 = vld [vmem:[%s39_s0] sm:$0x3]  ;;  %s22_s0 = smov 8  }
   0x2   :  { %5 = vst [vmem:[#allocation1] sm:$0x3] %v4_v0 }
   0x9   :  { %v10_v1 = vld [vmem:[#allocation1 + $0x1] sm:$0x1]   ;;  %v6_v2 = vld [vmem:[#allocation1] sm:$0x1]  }
   0xa   :  { %11 = vrot.lane.b32.xlu0 %v10_v1, %s22_s0  ;;  %8 = vst.msk [vmem:[#allocation0] sm:$0x1] %vm7_vm0, %v6_v2  }
  0x7c   :  { %v12_v3 = vpop.permute.xlu0 %11  }
  0x7d   :  { %14 = vst.msk [vmem:[#allocation0] sm:$0x1] %vm13_vm1, %v12_v3  }
  0x84   :  { %v18_v4 = vld [vmem:[#allocation0] sm:$0x1] }
  0x85   :  { %20 = vst [vmem:[%s40_s1] sm:$0x1] %v18_v4 }

// kernel: vision_language_model.1
= control target key start
LH: loop header
LB: loop body
LE: loop exit
PB: predicated region body
PF: predicated region fallthrough
CT: control target
= control target key end

     0   :  { %s3116_s6 = smov 1   ;;  %s3117_s10 = smov 2   ;;  %s3811_s0 = inlined_call_operand.smem [shape: u32[49], index: -1, kind: input, shape index: {}] }
   0x1   :  { %s3180_s5 = sld [smem:[%s3811_s0]]   ;;  %s3118_s14 = smov 3  }
   0x2   :  { %s3185_s9 = sld [smem:[%s3811_s0 + %s3116_s6]]   ;;  %s3119_s18 = smov 4  }
   0x3   :  { %s3190_s13 = sld [smem:[%s3811_s0 + %s3117_s10]]   ;;  %s3120_s22 = smov 5  }
   0x4   :  { %s3195_s17 = sld [smem:[%s3811_s0 + %s3118_s14]]   ;;  %s3121_s26 = smov 6  }
   0x5   :  { %s3200_s21 = sld [smem:[%s3811_s0 + %s3119_s18]]   ;;  %s3122_s30 = smov 7  }
   0x6   :  { %s3205_s25 = sld [smem:[%s3811_s0 + %s3120_s22]]   ;;  %s3123_s4 = smov 8  }
   0x7   :  { %s3210_s29 = sld [smem:[%s3811_s0 + %s3121_s26]]   ;;  %s3124_s10 = smov 9  }
   0x8   :  { %s3215_s3 = sld [smem:[%s3811_s0 + %s3122_s30]]   ;;  %s3125_s15 = smov 10  }
   0x9   :  { %s3220_s8 = sld [smem:[%s3811_s0 + %s3123_s4]]   ;;  %s3126_s20 = smov 11  }
   0xa   :  { %s3225_s14 = sld [smem:[%s3811_s0 + %s3124_s10]]   ;;  %s3127_s26 = smov 12  }
   0xb   :  { %s3230_s19 = sld [smem:[%s3811_s0 + %s3125_s15]]   ;;  %s3128_s1 = smov 13  }
   0xc   :  { %s3235_s24 = sld [smem:[%s3811_s0 + %s3126_s20]]   ;;  %s3129_s7 = smov 14  }
   0xd   :  { %s3240_s30 = sld [smem:[%s3811_s0 + %s3127_s26]]   ;;  %s3130_s15 = smov 15  }
   0xe   :  { %s3245_s6 = sld [smem:[%s3811_s0 + %s3128_s1]]   ;;  %s3131_s22 = smov 16  }
   0xf   :  { %s3250_s12 = sld [smem:[%s3811_s0 + %s3129_s7]]   ;;  %s3132_s28 = smov 17  }
  0x10   :  { %s3255_s20 = sld [smem:[%s3811_s0 + %s3130_s15]]   ;;  %s3133_s7 = smov 18  }
  0x11   :  { %s3260_s27 = sld [smem:[%s3811_s0 + %s3131_s22]]   ;;  %s3134_s15 = smov 19  }
  0x12   :  { %s3265_s4 = sld [smem:[%s3811_s0 + %s3132_s28]]   ;;  %s3135_s22 = smov 20  }
  0x13   :  { %3824 = sst [smem:[#allocation8_spill]] %s3240_s30  ;;  %s3136_s28 = smov 21  }
  0x14   :  { %s3163_s23 = smov 48  }
  0x15   :  { %3825 = sst [smem:[#allocation9_spill]] %s3250_s12 }
  0x16   :  { %3826 = sst [smem:[#allocation10_spill]] %s3255_s20 }
  0x17   :  { %3827 = sst [smem:[#allocation11_spill]] %s3260_s27 }
  0x18   :  { %3828 = sst [smem:[#allocation12_spill]] %s3265_s4 }
  0x19   :  { %s3270_s12 = sld [smem:[%s3811_s0 + %s3133_s7]]   ;;  %s3137_s7 = smov 22  }
  0x1a   :  { %s3275_s20 = sld [smem:[%s3811_s0 + %s3134_s15]]   ;;  %s3138_s15 = smov 23  }
  0x1b   :  { %s3280_s27 = sld [smem:[%s3811_s0 + %s3135_s22]]   ;;  %s3139_s22 = smov 24  }
  0x1c   :  { %s3285_s4 = sld [smem:[%s3811_s0 + %s3136_s28]]   ;;  %s3140_s28 = smov 25  }
  0x1d   :  { %s3295_s30 = sld [smem:[%s3811_s0 + %s3138_s15]]   ;;  %s3142_s15 = smov 27  }
  0x1f   :  { %3829 = sst [smem:[#allocation13_spill]] %s3270_s12 }
  0x20   :  { %s3290_s12 = sld [smem:[%s3811_s0 + %s3137_s7]]   ;;  %s3141_s7 = smov 26  }
  0x21   :  { %3830 = sst [smem:[#allocation14_spill]] %s3280_s27 }
  0x22   :  { %3831 = sst [smem:[#allocation15_spill]] %s3285_s4 }
  0x23   :  { %3833 = sst [smem:[#allocation17_spill]] %s3295_s30 }
  0x24   :  { %s3300_s27 = sld [smem:[%s3811_s0 + %s3139_s22]]   ;;  %s3143_s22 = smov 28  }
  0x25   :  { %s3305_s4 = sld [smem:[%s3811_s0 + %s3140_s28]]   ;;  %s3144_s28 = smov 29  }
  0x26   :  { %3832 = sst [smem:[#allocation16_spill]] %s3290_s12 }
  0x27   :  { %s3310_s12 = sld [smem:[%s3811_s0 + %s3141_s7]]   ;;  %s3145_s7 = smov 30  }
  0x28   :  { %s3315_s30 = sld [smem:[%s3811_s0 + %s3142_s15]]   ;;  %s3146_s15 = smov 31  }
  0x2a   :  { %3834 = sst [smem:[#allocation18_spill]] %s3300_s27 }
  0x2b   :  { %3835 = sst [smem:[#allocation19_spill]] %s3305_s4 }
  0x2c   :  { %s3320_s27 = sld [smem:[%s3811_s0 + %s3143_s22]]   ;;  %s3147_s22 = smov 32  }
  0x2d   :  { %3836 = sst [smem:[#allocation20_spill]] %s3310_s12 }
  0x2e   :  { %3837 = sst [smem:[#allocation21_spill]] %s3315_s30 }
  0x2f   :  { %s3325_s4 = sld [smem:[%s3811_s0 + %s3144_s28]]   ;;  %s3148_s28 = smov 33  }
  0x30   :  { %s3330_s12 = sld [smem:[%s3811_s0 + %s3145_s7]]   ;;  %s3149_s7 = smov 34  }
  0x31   :  { %s3335_s30 = sld [smem:[%s3811_s0 + %s3146_s15]]   ;;  %s3150_s15 = smov 35  }
  0x32   :  { %3838 = sst [smem:[#allocation22_spill]] %s3320_s27 }
  0x33   :  { %s3340_s27 = sld [smem:[%s3811_s0 + %s3147_s22]]   ;;  %s3151_s22 = smov 36  }
  0x35   :  { %3839 = sst [smem:[#allocation23_spill]] %s3325_s4 }
  0x36   :  { %3840 = sst [smem:[#allocation24_spill]] %s3330_s12 }
  0x37   :  { %3841 = sst [smem:[#allocation25_spill]] %s3335_s30 }
  0x38   :  { %s3345_s4 = sld [smem:[%s3811_s0 + %s3148_s28]]   ;;  %s3152_s28 = smov 37  }
  0x39   :  { %3842 = sst [smem:[#allocation26_spill]] %s3340_s27 }
  0x3a   :  { %s3350_s12 = sld [smem:[%s3811_s0 + %s3149_s7]]   ;;  %s3153_s7 = smov 38  }
  0x3b   :  { %s3355_s30 = sld [smem:[%s3811_s0 + %s3150_s15]]   ;;  %s3154_s15 = smov 39  }
  0x3c   :  { %s3360_s27 = sld [smem:[%s3811_s0 + %s3151_s22]]   ;;  %s3155_s22 = smov 40  }
  0x3e   :  { %3843 = sst [smem:[#allocation27_spill]] %s3345_s4 }
  0x3f   :  { %s3365_s4 = sld [smem:[%s3811_s0 + %s3152_s28]]   ;;  %s3156_s28 = smov 41  }
  0x40   :  { %3844 = sst [smem:[#allocation28_spill]] %s3350_s12 }
  0x41   :  { %3845 = sst [smem:[#allocation29_spill]] %s3355_s30 }
  0x42   :  { %3846 = sst [smem:[#allocation30_spill]] %s3360_s27 }
  0x43   :  { %s3370_s12 = sld [smem:[%s3811_s0 + %s3153_s7]]   ;;  %s3157_s7 = smov 42  }
  0x44   :  { %s3375_s30 = sld [smem:[%s3811_s0 + %s3154_s15]]   ;;  %s3158_s15 = smov 43  }
  0x45   :  { %3847 = sst [smem:[#allocation31_spill]] %s3365_s4 }
  0x46   :  { %s3380_s27 = sld [smem:[%s3811_s0 + %s3155_s22]]   ;;  %s3159_s22 = smov 44  }
  0x47   :  { %s3385_s4 = sld [smem:[%s3811_s0 + %s3156_s28]]   ;;  %s3160_s28 = smov 45  }
  0x49   :  { %3848 = sst [smem:[#allocation32_spill]] %s3370_s12 }
  0x4a   :  { %3849 = sst [smem:[#allocation33_spill]] %s3375_s30 }
  0x4b   :  { %s3390_s12 = sld [smem:[%s3811_s0 + %s3157_s7]]   ;;  %s3161_s7 = smov 46  }
  0x4c   :  { %3850 = sst [smem:[#allocation34_spill]] %s3380_s27 }
  0x4d   :  { %3851 = sst [smem:[#allocation35_spill]] %s3385_s4 }
  0x4e   :  { %s3395_s30 = sld [smem:[%s3811_s0 + %s3158_s15]]   ;;  %s3162_s15 = smov 47  }
  0x4f   :  { %s3400_s27 = sld [smem:[%s3811_s0 + %s3159_s22]]  }
  0x50   :  { %s3405_s4 = sld [smem:[%s3811_s0 + %s3160_s28]]  }
  0x51   :  { %3852 = sst [smem:[#allocation36_spill]] %s3390_s12 }
  0x52   :  { %s3410_s12 = sld [smem:[%s3811_s0 + %s3161_s7]]  }
  0x54   :  { %3853 = sst [smem:[#allocation37_spill]] %s3395_s30 }
  0x55   :  { %3854 = sst [smem:[#allocation38_spill]] %s3400_s27 }
  0x56   :  { %s2502_s30 = sld [smem:[%s3811_s0 + %s3162_s15]]  }
  0x57   :  { %s3418_s27 = sld [smem:[%s3811_s0 + %s3163_s23]]  }
  0x58   :  { %102 = vsyncpa [#allocation3], 0 }
  0x59   :  { %103 = vsyncpa [#allocation4], 0  ;;  %s3164_s28 = smov [#allocation2]  }
  0x5a   :  { %s204_s1 = sshll.u32 %s3164_s28, 4  ;;  %s205_s1 = int_to_ptr.vmem [resolvable:$true] %s204_s1 }
  0x5c   :  { %s3068_s2 = scalar_lea.hbm %s2502_s30, 16 }
  0x5d   :  { %p3069_p0 = scmp.ne.s32.totalorder %s2502_s30, %s3068_s2  ;;  %p3072_p1 = scmp.lt.u32.totalorder %s3068_s2, %s2502_s30 }
  0x5f   :  { %p3074_p2 = pnand %p3072_p1, %p3069_p0 }
  0x61   :  { %3077 = shalt.err (!%p3074_p2)
}
  0x62   :  { %s3078_s7 = scalar_lea.vmem %s205_s1, 16  ;;  %s3082_s10 = scalar_lea.vmem %s205_s1, 32 }
  0x63   :  { %p3079_p3 = scmp.ne.s32.totalorder %s205_s1, %s3078_s7  ;;  %p3083_p4 = scmp.lt.s32.totalorder %s205_s1, %s205_s1 }
  0x64   :  { %p3084_p5 = scmp.lt.s32.totalorder %s3082_s10, %s3078_s7 }
  0x66   :  { %p3085_p6 = por %p3084_p5, %p3083_p4 }
  0x68   :  { %p3086_p7 = pnand %p3085_p6, %p3079_p3 }
  0x6a   :  { %3089 = shalt.err (!%p3086_p7)
}
  0x6b   :  { %207 = dma.hbm_to_vmem [thread:$0]  %s2502_s30, 16, %s205_s1, [#allocation3]  }
  0x6c   :  { %3112 = dma.done.wait [#allocation3], 16  }
  0x6d   :  { %3113 = vsyncadd [#allocation3], 4294967280  ;;  %v3165_v0 = vmov 0   ;;  %v2942_v1 = vld [vmem:[%s3195_s17] sm:$0xff]   ;;  %v2943_v2 = vld [vmem:[%s3195_s17 + $0x8] sm:$0xff]   ;;  %vm319_vm0 = vcmask 523264   ;;  %v471_v53 = vlaneseq }
  0x6e   :  { %323 = vmatprep.subr.bf16.mxu0 %v3165_v0  ;;  %2941 = vset.pattern.permute.xlu1 %v3165_v0  ;;  %v2944_v3 = vld [vmem:[%s3195_s17 + $0x10] sm:$0xff]   ;;  %v2945_v4 = vld [vmem:[%s3195_s17 + $0x18] sm:$0xff]   ;;  %v2946_v5 = vld [vmem:[%s3195_s17 + $0x20] sm:$0xff]   ;;  %vm368_vm1 = vcmask 261120   ;;  %v3166_v29 = vmov 0.0   ;;  %vm3167_vm2 = vmmov 0  }
  0x6f   :  { %2940 = vset.pattern.permute.xlu0 %v3165_v0  ;;  %324 = vmatpush1.bf16.msra.mxu0 %v2942_v1  ;;  %v213_v6 = vld [vmem:[%s3180_s5 + $0x8] sm:$0xff]  ;;  %v2948_v9 = vld [vmem:[%s3195_s17 + $0x30] sm:$0xff]   ;;  %v2949_v10 = vld [vmem:[%s3195_s17 + $0x38] sm:$0xff]   ;;  %s3168_s0 = smov 96   ;;  %v3465_v54 = vand.u32 127, %v471_v53  ;;  %vm532_vm7 = vcmask 64512  }
  0x70   :  { %325 = vmatprep.subr.bf16.mxu0 %v3165_v0  ;;  %v239_v7 = vpack.c.bf16 %v213_v6, %v213_v6  ;;  %v2947_v8 = vld [vmem:[%s3195_s17 + $0x28] sm:$0xff]   ;;  %v2950_v11 = vld [vmem:[%s3195_s17 + $0x40] sm:$0xff]   ;;  %v2952_v13 = vld [vmem:[%s3195_s17 + $0x50] sm:$0xff]   ;;  %2684 = vmatprep.subr.bf16.mxu1 %v3166_v29  ;;  %vm627_vm8 = vcmask 1043456   ;;  %vm1218_vm9 = vcmask 130048   ;;  %s3866_s30 = sld [smem:[#allocation12_spill]] }
  0x71   :  { %v2951_v12 = vld [vmem:[%s3195_s17 + $0x48] sm:$0xff]   ;;  %v2953_v14 = vld [vmem:[%s3195_s17 + $0x58] sm:$0xff]   ;;  %v212_v15 = vld [vmem:[%s3180_s5] sm:$0xff]  ;;  %2686 = vmatprep.mubr.msk.bf16.mxu1 %vm3167_vm2, %v3166_v29  ;;  %vm475_vm3 = vcmp.lt.s32.totalorder %v3465_v54, 16  ;;  %vm551_vm4 = vcmp.ge.s32.totalorder %v3465_v54, 16  ;;  %vm552_vm5 = vcmp.lt.s32.totalorder %v3465_v54, 32 }
  0x72   :  { %2517 = vmatprep.mubr.msk.bf16.mxu0 %vm319_vm0, %v239_v7  ;;  %v238_v16 = vpack.c.bf16 %v212_v15, %v212_v15  ;;  %v2504_v17 = vld [vmem:[%s3200_s21] ss:$0 sm:$0xff]  ;;  %v2955_v30 = vld [vmem:[%s3215_s3 + $0x8] sm:$0xff]   ;;  %v3469_v56 = vsel %vm475_vm3, 1.0, %v3166_v29  ;;  %vm553_vm6 = vmand %vm551_vm4, %vm552_vm5  ;;  %s3169_s5 = smov 64   ;;  %s3857_s17 = sld [smem:[#allocation18_spill]] }
  0x73   :  { %326 = vmatpush1.bf16.msra.mxu0 %v2943_v2  ;;  %v363_v19 = vld [vmem:[%s3185_s9] sm:$0xff]  ;;  %v3478_v60 = vsel %vm553_vm6, 1.0, %v3166_v29  ;;  %v3531_v53 = vld [vmem:[%s3275_s20 + $0x8] sm:$0xff]  ;;  %s3855_s9 = sld [smem:[#allocation8_spill]]  ;;  %s3858_s21 = sld [smem:[#allocation19_spill]]  ;;  %vm2409_vm12 = vcmask 7168  }
  0x74   :  { %327 = vmatprep.subr.bf16.mxu0 %v3165_v0  ;;  %v2954_v28 = vld [vmem:[%s3215_s3] sm:$0xff]   ;;  %s3861_s3 = sld [smem:[#allocation21_spill]]  ;;  %s3869_s11 = sld [smem:[#allocation23_spill]]  ;;  %vm2439_vm13 = vcmask 0  }
  0x75   :  { %v2518_v40 = vld [vmem:[%s3205_s25] ss:$0 sm:$0xff]  ;;  %s3859_s25 = sld [smem:[#allocation10_spill]]  ;;  %s3871_s16 = sld [smem:[#allocation24_spill]] }
  0x76   :  { %v2519_v42 = vld [vmem:[%s3210_s29] ss:$0 sm:$0xff]  ;;  %s3860_s29 = sld [smem:[#allocation9_spill]]  ;;  %s3870_s15 = sld [smem:[#allocation26_spill]] }
  0x77   :  { %328 = vmatpush1.bf16.msra.mxu0 %v2944_v3  ;;  %v2520_v46 = vld [vmem:[%s3220_s8] ss:$0 sm:$0xff]  ;;  %s3862_s8 = sld [smem:[#allocation14_spill]]  ;;  %s3872_s18 = sld [smem:[#allocation25_spill]] }
  0x78   :  { %329 = vmatprep.subr.bf16.mxu0 %v3165_v0  ;;  %s3873_s23 = sld [smem:[#allocation27_spill]]  ;;  %s3874_s22 = sld [smem:[#allocation15_spill]] }
  0x79   :  { %s3170_s26 = smov 32   ;;  %s3875_s28 = sld [smem:[#allocation30_spill]] }
  0x7a   :  { %s3876_s1 = sld [smem:[#allocation31_spill]]  ;;  %s3877_s2 = sld [smem:[#allocation34_spill]] }
  0x7b   :  { %330 = vmatpush1.bf16.msra.mxu0 %v2945_v4  ;;  %s3878_s7 = sld [smem:[#allocation32_spill]]  ;;  %s3879_s10 = sld [smem:[#allocation33_spill]] }
  0x7c   :  { %331 = vmatprep.subr.bf16.mxu0 %v3165_v0 }
  0x7f   :  { %332 = vmatpush1.bf16.msra.mxu0 %v2946_v5 }
  0x80   :  { %333 = vmatprep.subr.bf16.mxu0 %v3165_v0 }
  0x83   :  { %334 = vmatpush1.bf16.msra.mxu0 %v2947_v8 }
  0x84   :  { %335 = vmatprep.subr.bf16.mxu0 %v3165_v0 }
  0x87   :  { %336 = vmatpush1.bf16.msra.mxu0 %v2948_v9 }
  0x88   :  { %337 = vmatprep.subr.bf16.mxu0 %v3165_v0 }
  0x8b   :  { %338 = vmatpush1.bf16.msra.mxu0 %v2949_v10 }
  0x8c   :  { %339 = vmatprep.subr.bf16.mxu0 %v3165_v0 }
  0x8f   :  { %340 = vmatpush1.bf16.msra.mxu0 %v2950_v11 }
  0x90   :  { %341 = vmatprep.subr.bf16.mxu0 %v3165_v0 }
  0x93   :  { %342 = vmatpush1.bf16.msra.mxu0 %v2951_v12 }
  0x94   :  { %343 = vmatprep.subr.bf16.mxu0 %v3165_v0 }
  0x97   :  { %344 = vmatpush1.bf16.msra.mxu0 %v2952_v13 }
  0x98   :  { %345 = vmatprep.subr.bf16.mxu0 %v3165_v0  ;;  %v365_v0 = vld [vmem:[%s3190_s13] sm:$0xff]  ;;  %s3856_s13 = sld [smem:[#allocation20_spill]] }
  0x9b   :  { %346 = vmatpush1.bf16.msra.mxu0 %v2953_v14 }
  0x9c   :  { %2676 = vmatprep.subr.bf16.mxu0 %v3166_v29 }
  0x9e   :  { %356 = vmatmul.mubr.bf16.vlgmr.msra.gmra.mrb[0].mxu0 %v238_v16 }
  0x9f   :  { %2677 = vmatpush3.bf16.msra.mxu0 %v2954_v28  ;;  %2680 = vmatprep.mubr.msk.bf16.mxu0 %vm3167_vm2, %v3166_v29 }
  0xa0   :  { %2678 = vmatprep.subr.bf16.mxu0 %v3166_v29 }
  0xa3   :  { %2679 = vmatpush3.bf16.msra.mxu0 %v2955_v30 }
  0xa4   :  { %2716 = vmatprep.subr.bf16.mxu0 %v3166_v29 }
 0x171   :  { %v357_v18 = vpop.f32.mrb[0].mxu0 }
 0x172   :  { %v358_v20 = vadd.f32 %v2504_v17, %v357_v18  ;;  %v359_v21 = vpop.f32.mrb[1].mxu0 }
 0x173   :  { %v360_v22 = vpop.f32.mrb[2].mxu0 }
 0x174   :  { %v3436_v23 = vadd.f32 %v363_v19, %v358_v20  ;;  %v361_v24 = vpop.f32.mrb[3].mxu0 }
 0x176   :  { %v369_v25 = vsel %vm368_vm1, %v3436_v23, 0.0  ;;  %v374_v26 = vmul.f32 %v3436_v23, %v3436_v23 }
 0x177   :  { %370 = vadd.xlane.f32.xlu0 %v369_v25 }
 0x178   :  { %v375_v27 = vsel %vm368_vm1, %v374_v26, 0.0 }
 0x17b   :  { %376 = vadd.xlane.f32.xlu0 %v375_v27 }
 0x204   :  { %v371_v31 = vpop.xlane.xlu0 %370 }
 0x205   :  { %v373_v32 = vmul.f32 0.03125, %v371_v31 }
 0x207   :  { %v379_v34 = vmul.f32 %v373_v32, %v373_v32  ;;  %v381_v38 = vsub.f32 %v3436_v23, %v373_v32 }
 0x208   :  { %v377_v33 = vpop.xlane.xlu0 %376 }
 0x209   :  { %v378_v35 = vmul.f32 0.03125, %v377_v33 }
 0x20b   :  { %v380_v36 = vsub.f32 %v378_v35, %v379_v34 }
 0x20d   :  { %v382_v37 = vadd.f32 1e-05, %v380_v36 }
 0x20f   :  { %2990 = vrsqrt.f32 %v382_v37 }
 0x219   :  { %v2991_v39 = vpop.eup %2990 }
 0x21a   :  { %v384_v41 = vmul.f32 %v2991_v39, %v381_v38 }
 0x21c   :  { %v391_v43 = vmul.f32 %v2518_v40, %v384_v41 }
 0x21e   :  { %v398_v44 = vadd.f32 %v2519_v42, %v391_v43  ;;  %v2956_v43 = vld [vmem:[%s3225_s14] sm:$0xff]  }
 0x220   :  { %v403_v45 = vpack.c.bf16 %v398_v44, %v398_v44 }
 0x222   :  { %2681 = vmatmul.mubr.msk.bf16.vlgmr.msra.gmra.mrb[4].mxu0 %vm368_vm1, %v403_v45  ;;  %v2957_v45 = vld [vmem:[%s3225_s14 + $0x8] sm:$0xff]   ;;  %s3863_s14 = sld [smem:[#allocation11_spill]] }
 0x223   :  { %2720 = vmatprep.mubr.msk.bf16.mxu0 %vm3167_vm2, %v3166_v29 }
 0x2f5   :  { %v460_v47 = vpop.f32.mrb[4].mxu0 }
 0x2f6   :  { %v3460_v48 = vadd.f32 %v2520_v46, %v460_v47  ;;  %v2682_v49 = vpop.f32.mrb[5].mxu0  ;;  %v3523_v46 = vld [vmem:[%s3275_s20] sm:$0xff]  ;;  %s3868_s20 = sld [smem:[#allocation29_spill]] }
 0x2f7   :  { %v463_v50 = vpop.f32.mrb[6].mxu0  ;;  %v1039_v47 = vsel %vm368_vm1, %v3523_v46, 0.0 }
 0x2f8   :  { %v2683_v51 = vpop.f32.mrb[7].mxu0  ;;  %v473_v52 = vpack.c.bf16 %v3460_v48, %v3460_v48  ;;  %v479_v58 = vmul.f32 %v3469_v56, %v3460_v48  ;;  %v556_v61 = vmul.f32 %v3478_v60, %v3460_v48 }
 0x2fa   :  { %482 = vrot.lane.b32.xlu1 %v473_v52, %s3168_s0  ;;  %v480_v59 = vpack.c.bf16 %v479_v58, %v479_v58  ;;  %v557_v62 = vpack.c.bf16 %v556_v61, %v556_v61 }
 0x36c   :  { %v483_v55 = vpop.permute.xlu1 %482 }
 0x36d   :  { %v488_v57 = vsel %vm368_vm1, %v483_v55, 0  ;;  %v1042_v55 = vsel %vm368_vm1, %v3531_v53, 0.0 }
 0x36e   :  { %2685 = vmatpush3.bf16.xpose.msra.mxu1 %v488_v57 }
 0x36f   :  { %2690 = vmatprep.subr.bf16.mxu1 %v3166_v29 }
 0x375   :  { %2687 = vmatmul.mubr.msk.bf16.vlgmr.msra.gmra.mrb[0].mxu1 %vm368_vm1, %v480_v59 }
 0x376   :  { %2691 = vmatpush3.bf16.xpose.msra.mxu1 %v488_v57  ;;  %2692 = vmatprep.mubr.msk.bf16.mxu1 %vm3167_vm2, %v3166_v29  ;;  %v2530_v57 = vld [vmem:[%s3230_s19] ss:$0 sm:$0xff]  ;;  %s3864_s19 = sld [smem:[#allocation22_spill]] }
 0x377   :  { %2696 = vmatprep.subr.bf16.mxu1 %v3166_v29 }
 0x37d   :  { %2693 = vmatmul.mubr.msk.bf16.vlgmr.msra.gmra.mrb[4].mxu1 %vm368_vm1, %v557_v62 }
 0x37e   :  { %2698 = vmatprep.mubr.msk.bf16.mxu1 %vm3167_vm2, %v3166_v29 }
 0x448   :  { %v524_v63 = vpop.f32.mrb[0].mxu1 }
 0x449   :  { %v530_v1 = vmul.f32 0.25, %v524_v63  ;;  %v2688_v2 = vpop.f32.mrb[1].mxu1 }
 0x44a   :  { %v527_v3 = vpop.f32.mrb[2].mxu1 }
 0x44b   :  { %v2689_v4 = vpop.f32.mrb[3].mxu1  ;;  %v531_v5 = vadd.f32 %v530_v1, %v365_v0  ;;  %v1047_v3 = vmul.f32 %v3523_v46, %v3523_v46 }
 0x44d   :  { %v533_v6 = vsel %vm532_vm7, %v531_v5, -inf }
 0x44e   :  { %534 = vmax.xlane.f32.xlu0 %v533_v6 }
 0x450   :  { %v595_v7 = vpop.f32.mrb[4].mxu1 }
 0x451   :  { %v601_v8 = vmul.f32 0.25, %v595_v7  ;;  %v2694_v9 = vpop.f32.mrb[5].mxu1  ;;  %v2958_v7 = vld [vmem:[%s3245_s6] sm:$0xff]  }
 0x452   :  { %v598_v10 = vpop.f32.mrb[6].mxu1  ;;  %2717 = vmatpush3.bf16.msra.mxu0 %v2958_v7 }
 0x453   :  { %v2695_v11 = vpop.f32.mrb[7].mxu1  ;;  %v602_v12 = vadd.f32 %v601_v8, %v365_v0  ;;  %2718 = vmatprep.subr.bf16.mxu0 %v3166_v29  ;;  %v2959_v8 = vld [vmem:[%s3245_s6 + $0x8] sm:$0xff]   ;;  %s3867_s6 = sld [smem:[#allocation13_spill]] }
 0x455   :  { %v603_v13 = vsel %vm532_vm7, %v602_v12, -inf }
 0x456   :  { %604 = vmax.xlane.f32.xlu1 %v603_v13  ;;  %2719 = vmatpush3.bf16.msra.mxu0 %v2959_v8 }
 0x457   :  { %2744 = vmatprep.subr.bf16.mxu0 %v3166_v29 }
 0x464   :  { %615 = vrot.lane.b32.xlu0 %v3478_v60, %s3169_s5 }
 0x468   :  { %545 = vrot.lane.b32.xlu0 %v3469_v56, %s3169_s5 }
 0x4db   :  { %v535_v14 = vpop.xlane.xlu0 %534 }
 0x4dc   :  { %v536_v15 = vsub.f32 %v531_v5, %v535_v14  ;;  %v1049_v5 = vsel %vm368_vm1, %v1047_v3, 0.0  ;;  %v2966_v3 = vld [vmem:[%s3859_s25 + $0x20] sm:$0xff]  }
 0x4de   :  { %v537_v16 = vmul.f32 1.442695, %v536_v15 }
 0x4df   :  { %v3497_v24 = vpop.permute.xlu0 %615 }
 0x4e0   :  { %2992 = vpow2.f32 %v537_v16  ;;  %v618_v26 = vmul.f32 %v3497_v24, %v3460_v48 }
 0x4e2   :  { %v619_v30 = vpack.c.bf16 %v618_v26, %v618_v26 }
 0x4e3   :  { %v605_v17 = vpop.xlane.xlu1 %604  ;;  %v3502_v27 = vpop.permute.xlu0 %545 }
 0x4e4   :  { %v606_v18 = vsub.f32 %v602_v12, %v605_v17  ;;  %v548_v28 = vmul.f32 %v3502_v27, %v3460_v48 }
 0x4e6   :  { %v607_v19 = vmul.f32 1.442695, %v606_v18  ;;  %v549_v31 = vpack.c.bf16 %v548_v28, %v548_v28 }
 0x4e8   :  { %2994 = vpow2.f32 %v607_v19 }
 0x4ea   :  { %v2993_v20 = vpop.eup %2992 }
 0x4eb   :  { %v539_v21 = vsel %vm532_vm7, %v2993_v20, 0.0 }
 0x4ec   :  { %540 = vadd.xlane.f32.xlu1 %v539_v21 }
 0x4f2   :  { %v2995_v22 = vpop.eup %2994 }
 0x4f3   :  { %v609_v25 = vsel %vm532_vm7, %v2995_v22, 0.0 }
 0x4f4   :  { %610 = vadd.xlane.f32.xlu0 %v609_v25 }
 0x4f8   :  { %1040 = vadd.xlane.f32.xlu0 %v1039_v47 }
 0x4fc   :  { %1043 = vadd.xlane.f32.xlu0 %v1042_v55  ;;  %v2552_v55 = vld [vmem:[%s3858_s21] ss:$0 sm:$0xff] }
 0x4fd   :  { %622 = vrot.lane.b32.xlu1 %v619_v30, %s3169_s5 }
 0x501   :  { %672 = vrot.lane.b32.xlu1 %v549_v31, %s3169_s5 }
 0x579   :  { %v541_v32 = vpop.xlane.xlu1 %540 }
 0x57d   :  { %v623_v33 = vpop.permute.xlu1 %622 }
 0x57e   :  { %v629_v34 = vsel %vm627_vm8, %v623_v33, 0 }
 0x57f   :  { %2697 = vmatpush3.bf16.msra.mxu1 %v629_v34 }
 0x580   :  { %2702 = vmatprep.subr.bf16.mxu1 %v3166_v29 }
 0x581   :  { %v611_v35 = vpop.xlane.xlu0 %610  ;;  %v673_v38 = vpop.permute.xlu1 %672 }
 0x582   :  { %2996 = vrcp.f32 %v611_v35  ;;  %v678_v40 = vsel %vm627_vm8, %v673_v38, 0  ;;  %v2535_v38 = vld [vmem:[%s3855_s9] ss:$0 sm:$0xff]  ;;  %s3882_s9 = sld [smem:[#allocation37_spill]] }
 0x583   :  { %2998 = vrcp.f32 %v541_v32 }
 0x585   :  { %v1041_v9 = vpop.xlane.xlu0 %1040 }
 0x586   :  { %v1045_v14 = vmul.f32 0.03125, %v1041_v9 }
 0x588   :  { %v1057_v19 = vmul.f32 %v1045_v14, %v1045_v14 }
 0x589   :  { %v1044_v10 = vpop.xlane.xlu0 %1043 }
 0x58c   :  { %v2997_v36 = vpop.eup %2996 }
 0x58d   :  { %v613_v37 = vmul.f32 %v2997_v36, %v2995_v22  ;;  %v2999_v41 = vpop.eup %2998  ;;  %v2534_v36 = vld [vmem:[%s3235_s24] ss:$0 sm:$0xff]  ;;  %s3865_s24 = sld [smem:[#allocation28_spill]] }
 0x58e   :  { %v543_v42 = vmul.f32 %v2999_v41, %v2993_v20  ;;  %v1046_v20 = vmul.f32 0.03125, %v1044_v10 }
 0x58f   :  { %v620_v39 = vpack.c.bf16 %v613_v37, %v613_v37 }
 0x590   :  { %v550_v44 = vpack.c.bf16 %v543_v42, %v543_v42  ;;  %v1058_v28 = vmul.f32 %v1046_v20, %v1046_v20  ;;  %v1062_v47 = vsub.f32 %v3531_v53, %v1046_v20 }
 0x591   :  { %2699 = vmatmul.mubr.msk.bf16.vlgmr.msra.gmra.mrb[8].mxu1 %vm532_vm7, %v620_v39  ;;  %v1061_v39 = vsub.f32 %v3523_v46, %v1045_v14  ;;  %v2553_v14 = vld [vmem:[%s3861_s3] ss:$0 sm:$0xff] }
 0x592   :  { %2703 = vmatpush3.bf16.msra.mxu1 %v678_v40  ;;  %2704 = vmatprep.mubr.msk.bf16.mxu1 %vm3167_vm2, %v3166_v29 }
 0x593   :  { %2708 = vmatprep.subr.bf16.mxu1 %v3166_v29 }
 0x59d   :  { %2705 = vmatmul.mubr.msk.bf16.vlgmr.msra.gmra.mrb[8].mxu1 %vm532_vm7, %v550_v44  ;;  %v2960_v44 = vld [vmem:[%s3856_s13] sm:$0xff]  }
 0x59e   :  { %2709 = vmatpush3.bf16.msra.mxu1 %v2956_v43  ;;  %2712 = vmatprep.mubr.msk.bf16.mxu1 %vm3167_vm2, %v3166_v29 }
 0x59f   :  { %2710 = vmatprep.subr.bf16.mxu1 %v3166_v29 }
 0x5a2   :  { %2711 = vmatpush3.bf16.msra.mxu1 %v2957_v45  ;;  %v2551_v45 = vld [vmem:[%s3857_s17] ss:$0 sm:$0xff] }
 0x5a3   :  { %2724 = vmatprep.subr.bf16.mxu1 %v3166_v29 }
 0x670   :  { %v714_v48 = vpop.f32.mrb[8].mxu1 }
 0x671   :  { %v720_v49 = vpack.c.bf16 %v714_v48, %v714_v48  ;;  %v2706_v50 = vpop.f32.mrb[9].mxu1 }
 0x672   :  { %v717_v51 = vpop.f32.mrb[10].mxu1 }
 0x673   :  { %v2707_v52 = vpop.f32.mrb[11].mxu1  ;;  %2713 = vmatmul.mubr.msk.bf16.vlgmr.msra.gmra.mrb[12].mxu1 %vm368_vm1, %v720_v49 }
 0x674   :  { %2740 = vmatprep.mubr.msk.bf16.mxu1 %vm3167_vm2, %v3166_v29  ;;  %v2961_v52 = vld [vmem:[%s3856_s13 + $0x8] sm:$0xff]   ;;  %s3883_s13 = sld [smem:[#allocation38_spill]] }
 0x746   :  { %v776_v58 = vpop.f32.mrb[12].mxu1 }
 0x747   :  { %v777_v59 = vadd.f32 %v2530_v57, %v776_v58  ;;  %v2714_v61 = vpop.f32.mrb[13].mxu1 }
 0x748   :  { %v779_v62 = vpop.f32.mrb[14].mxu1 }
 0x749   :  { %v3537_v63 = vadd.f32 %v777_v59, %v3436_v23  ;;  %v2715_v0 = vpop.f32.mrb[15].mxu1  ;;  %v1048_v23 = vmul.f32 %v3531_v53, %v3531_v53  ;;  %v2962_v62 = vld [vmem:[%s3859_s25] sm:$0xff]  }
 0x74a   :  { %2725 = vmatpush3.bf16.msra.mxu1 %v2962_v62  ;;  %v2963_v0 = vld [vmem:[%s3859_s25 + $0x8] sm:$0xff]  }
 0x74b   :  { %v785_v1 = vsel %vm368_vm1, %v3537_v63, 0.0  ;;  %v789_v2 = vmul.f32 %v3537_v63, %v3537_v63  ;;  %v1052_v6 = vsel %vm368_vm1, %v1048_v23, 0.0  ;;  %2726 = vmatprep.subr.bf16.mxu1 %v3166_v29  ;;  %v2969_v23 = vld [vmem:[%s3859_s25 + $0x38] sm:$0xff]  }
 0x74c   :  { %786 = vadd.xlane.f32.xlu1 %v785_v1  ;;  %v2964_v1 = vld [vmem:[%s3859_s25 + $0x10] sm:$0xff]  }
 0x74d   :  { %v790_v4 = vsel %vm368_vm1, %v789_v2, 0.0  ;;  %v2965_v2 = vld [vmem:[%s3859_s25 + $0x18] sm:$0xff]  }
 0x74e   :  { %791 = vadd.xlane.f32.xlu0 %v790_v4  ;;  %2727 = vmatpush3.bf16.msra.mxu1 %v2963_v0  ;;  %v2967_v4 = vld [vmem:[%s3859_s25 + $0x28] sm:$0xff]  }
 0x74f   :  { %2728 = vmatprep.subr.bf16.mxu1 %v3166_v29 }
 0x752   :  { %1050 = vadd.xlane.f32.xlu0 %v1049_v5  ;;  %2729 = vmatpush3.bf16.msra.mxu1 %v2964_v1  ;;  %v2968_v5 = vld [vmem:[%s3859_s25 + $0x30] sm:$0xff]   ;;  %s3171_s25 = smov [#allocation5]  }
 0x753   :  { %2730 = vmatprep.subr.bf16.mxu1 %v3166_v29 }
 0x756   :  { %1053 = vadd.xlane.f32.xlu0 %v1052_v6  ;;  %2731 = vmatpush3.bf16.msra.mxu1 %v2965_v2  ;;  %v2536_v6 = vld [vmem:[%s3860_s29] ss:$0 sm:$0xff]  ;;  %s2447_s29 = sshll.u32 %s3171_s25, 4  ;;  %s2448_s29 = int_to_ptr.vmem [resolvable:$true] %s2447_s29 }
 0x757   :  { %2732 = vmatprep.subr.bf16.mxu1 %v3166_v29  ;;  %s3090_s3 = scalar_lea.vmem %s2448_s29, 16  ;;  %p3095_p9 = scmp.lt.s32.totalorder %s2448_s29, %s2448_s29 }
 0x758   :  { %p3091_p8 = scmp.ne.s32.totalorder %s2448_s29, %s3090_s3 }
 0x75a   :  { %2733 = vmatpush3.bf16.msra.mxu1 %v2966_v3 }
 0x75b   :  { %2734 = vmatprep.subr.bf16.mxu1 %v3166_v29 }
 0x75e   :  { %2735 = vmatpush3.bf16.msra.mxu1 %v2967_v4  ;;  %v1158_v4 = vld [vmem:[%s3862_s8] sm:$0xff] }
 0x75f   :  { %2736 = vmatprep.subr.bf16.mxu1 %v3166_v29 }
 0x762   :  { %2737 = vmatpush3.bf16.msra.mxu1 %v2968_v5 }
 0x763   :  { %2738 = vmatprep.subr.bf16.mxu1 %v3166_v29 }
 0x766   :  { %2739 = vmatpush3.bf16.msra.mxu1 %v2969_v23 }
 0x767   :  { %2776 = vmatprep.subr.bf16.mxu1 %v3166_v29 }
 0x7d9   :  { %v787_v11 = vpop.xlane.xlu1 %786 }
 0x7da   :  { %v788_v12 = vmul.f32 0.03125, %v787_v11 }
 0x7db   :  { %v792_v13 = vpop.xlane.xlu0 %791 }
 0x7dc   :  { %v794_v15 = vmul.f32 %v788_v12, %v788_v12  ;;  %v793_v16 = vmul.f32 0.03125, %v792_v13  ;;  %v796_v34 = vsub.f32 %v3537_v63, %v788_v12 }
 0x7de   :  { %v795_v17 = vsub.f32 %v793_v16, %v794_v15 }
 0x7df   :  { %v1051_v18 = vpop.xlane.xlu0 %1050 }
 0x7e0   :  { %v797_v21 = vadd.f32 1e-05, %v795_v17  ;;  %v1055_v22 = vmul.f32 0.03125, %v1051_v18 }
 0x7e2   :  { %3000 = vrsqrt.f32 %v797_v21  ;;  %v1059_v25 = vsub.f32 %v1055_v22, %v1057_v19 }
 0x7e3   :  { %v1054_v26 = vpop.xlane.xlu0 %1053 }
 0x7e4   :  { %v1063_v30 = vadd.f32 1e-05, %v1059_v25  ;;  %v1056_v31 = vmul.f32 0.03125, %v1054_v26 }
 0x7e6   :  { %3002 = vrsqrt.f32 %v1063_v30  ;;  %v1060_v32 = vsub.f32 %v1056_v31, %v1058_v28 }
 0x7e8   :  { %v1064_v33 = vadd.f32 1e-05, %v1060_v32 }
 0x7ea   :  { %3004 = vrsqrt.f32 %v1064_v33 }
 0x7ec   :  { %v3001_v35 = vpop.eup %3000 }
 0x7ed   :  { %v799_v37 = vmul.f32 %v3001_v35, %v796_v34 }
 0x7ef   :  { %v806_v40 = vmul.f32 %v2534_v36, %v799_v37 }
 0x7f0   :  { %v3003_v41 = vpop.eup %3002 }
 0x7f1   :  { %v1067_v42 = vmul.f32 %v3003_v41, %v1061_v39  ;;  %v813_v43 = vadd.f32 %v2535_v38, %v806_v40 }
 0x7f3   :  { %v818_v48 = vpack.c.bf16 %v813_v43, %v813_v43  ;;  %v1075_v51 = vmul.f32 %v2551_v45, %v1067_v42 }
 0x7f4   :  { %v3005_v49 = vpop.eup %3004 }
 0x7f5   :  { %v1068_v50 = vmul.f32 %v3005_v49, %v1062_v47  ;;  %2721 = vmatmul.mubr.msk.bf16.vlgmr.msra.gmra.mrb[8].mxu0 %vm368_vm1, %v818_v48  ;;  %v1083_v58 = vadd.f32 %v2552_v55, %v1075_v51 }
 0x7f6   :  { %2745 = vmatpush3.bf16.msra.mxu0 %v2960_v44  ;;  %2748 = vmatprep.mubr.msk.bf16.mxu0 %vm3167_vm2, %v3166_v29 }
 0x7f7   :  { %2746 = vmatprep.subr.bf16.mxu0 %v3166_v29  ;;  %v1076_v57 = vmul.f32 %v2551_v45, %v1068_v50 }
 0x7f9   :  { %v1084_v59 = vadd.f32 %v2552_v55, %v1076_v57  ;;  %v1159_v57 = vld [vmem:[%s3862_s8 + $0x8] sm:$0xff]  ;;  %s3094_s8 = scalar_lea.vmem %s2448_s29, 32 }
 0x7fa   :  { %2747 = vmatpush3.bf16.msra.mxu0 %v2961_v52  ;;  %p3096_p10 = scmp.lt.s32.totalorder %s3094_s8, %s3090_s3 }
 0x7fb   :  { %v1089_v61 = vpack.c.bf16 %v1084_v59, %v1083_v58  ;;  %2752 = vmatprep.subr.bf16.mxu0 %v3166_v29 }
 0x7fc   :  { %p3097_p11 = por %p3096_p10, %p3095_p9 }
 0x7fd   :  { %2749 = vmatmul.mubr.msk.bf16.vlgmr.msra.gmra.mrb[12].mxu0 %vm368_vm1, %v1089_v61 }
 0x7fe   :  { %2754 = vmatprep.mubr.msk.bf16.mxu0 %vm3167_vm2, %v3166_v29  ;;  %p3098_p12 = pnand %p3097_p11, %p3091_p8 }
 0x8c8   :  { %v875_v7 = vpop.f32.mrb[8].mxu0 }
 0x8c9   :  { %v876_v8 = vadd.f32 %v2536_v6, %v875_v7  ;;  %v2722_v9 = vpop.f32.mrb[9].mxu0 }
 0x8ca   :  { %v878_v10 = vpop.f32.mrb[10].mxu0 }
 0x8cb   :  { %v881_v11 = vmul.f32 %v876_v8, %v876_v8  ;;  %v2723_v12 = vpop.f32.mrb[11].mxu0 }
 0x8cd   :  { %v882_v13 = vmul.f32 %v881_v11, %v876_v8 }
 0x8cf   :  { %v883_v15 = vmul.f32 0.044715, %v882_v13 }
 0x8d0   :  { %v1146_v16 = vpop.f32.mrb[12].mxu0 }
 0x8d1   :  { %v884_v17 = vadd.f32 %v883_v15, %v876_v8  ;;  %v1147_v18 = vadd.f32 %v2553_v14, %v1146_v16  ;;  %v2750_v19 = vpop.f32.mrb[13].mxu0 }
 0x8d2   :  { %v1149_v20 = vpop.f32.mrb[14].mxu0 }
 0x8d3   :  { %v885_v21 = vmul.f32 0.7978846, %v884_v17  ;;  %v1150_v22 = vadd.f32 %v2553_v14, %v1149_v20  ;;  %v2751_v25 = vpop.f32.mrb[15].mxu0  ;;  %v1161_v26 = vmul.f32 %v3469_v56, %v1147_v18  ;;  %v1245_v28 = vmul.f32 %v3478_v60, %v1147_v18  ;;  %v2548_v14 = vld [vmem:[%s3863_s14] ss:$0 sm:$0xff] }
 0x8d4   :  { %v1241_v33 = vmul.f32 %v1147_v18, %v3502_v27  ;;  %v3596_v35 = vmul.f32 %v1147_v18, %v3497_v24 }
 0x8d5   :  { %3006 = vtanh.f32 %v885_v21  ;;  %v1162_v30 = vmul.f32 %v3469_v56, %v1150_v22  ;;  %v1246_v31 = vmul.f32 %v3478_v60, %v1150_v22  ;;  %v1160_v32 = vpack.c.bf16 %v1150_v22, %v1147_v18 }
 0x8d6   :  { %v1242_v34 = vmul.f32 %v1150_v22, %v3502_v27  ;;  %v3599_v36 = vmul.f32 %v1150_v22, %v3497_v24 }
 0x8d7   :  { %1165 = vrot.lane.b32.xlu0 %v1160_v32, %s3168_s0  ;;  %v1163_v37 = vpack.c.bf16 %v1162_v30, %v1161_v26  ;;  %v1247_v38 = vpack.c.bf16 %v1246_v31, %v1245_v28 }
 0x8d8   :  { %v1243_v39 = vpack.c.bf16 %v1242_v34, %v1241_v33  ;;  %v1320_v40 = vpack.c.bf16 %v3599_v36, %v3596_v35 }
 0x8df   :  { %v3007_v41 = vpop.eup %3006 }
 0x8e0   :  { %v887_v42 = vadd.f32 1.0, %v3007_v41 }
 0x8e2   :  { %v888_v43 = vmul.f32 0.5, %v887_v42 }
 0x8e4   :  { %v889_v44 = vmul.f32 %v888_v43, %v876_v8 }
 0x8e6   :  { %v906_v45 = vpack.c.bf16 %v889_v44, %v889_v44 }
 0x8e8   :  { %2741 = vmatmul.mubr.bf16.vlgmr.msra.gmra.mrb[16].mxu1 %v906_v45  ;;  %v2972_v45 = vld [vmem:[%s3864_s19] sm:$0xff]  }
 0x8e9   :  { %2780 = vmatprep.mubr.msk.bf16.mxu1 %vm3167_vm2, %v3166_v29  ;;  %2777 = vmatpush3.bf16.msra.mxu1 %v2972_v45 }
 0x8ea   :  { %2778 = vmatprep.subr.bf16.mxu1 %v3166_v29 }
 0x949   :  { %v1166_v27 = vpop.permute.xlu0 %1165 }
 0x94a   :  { %v1171_v24 = vsel %vm368_vm1, %v1166_v27, 0 }
 0x94b   :  { %2753 = vmatpush3.bf16.xpose.msra.mxu0 %v1171_v24 }
 0x94c   :  { %2758 = vmatprep.subr.bf16.mxu0 %v3166_v29 }
 0x952   :  { %2755 = vmatmul.mubr.msk.bf16.vlgmr.msra.gmra.mrb[16].mxu0 %vm368_vm1, %v1163_v37 }
 0x953   :  { %2759 = vmatpush3.bf16.xpose.msra.mxu0 %v1171_v24  ;;  %2760 = vmatprep.mubr.msk.bf16.mxu0 %vm3167_vm2, %v3166_v29 }
 0x954   :  { %2764 = vmatprep.subr.bf16.mxu0 %v3166_v29 }
 0x95a   :  { %2761 = vmatmul.mubr.msk.bf16.vlgmr.msra.gmra.mrb[20].mxu0 %vm368_vm1, %v1247_v38 }
 0x95b   :  { %2766 = vmatprep.mubr.msk.bf16.mxu0 %vm3167_vm2, %v3166_v29 }
 0x9bb   :  { %v989_v47 = vpop.f32.mrb[16].mxu1 }
 0x9bc   :  { %v2742_v48 = vpop.f32.mrb[17].mxu1  ;;  %v995_v13 = vadd.f32 %v989_v47, %v3537_v63 }
 0x9bd   :  { %v992_v49 = vpop.f32.mrb[18].mxu1 }
 0x9be   :  { %v2743_v50 = vpop.f32.mrb[19].mxu1  ;;  %v3624_v15 = vadd.f32 %v2548_v14, %v995_v13 }
 0x9c0   :  { %v1010_v16 = vmul.f32 %v3624_v15, %v3624_v15  ;;  %v1006_v44 = vsel %vm368_vm1, %v3624_v15, 0.0 }
 0x9c2   :  { %v1011_v17 = vsel %vm368_vm1, %v1010_v16, 0.0  ;;  %v2973_v16 = vld [vmem:[%s3864_s19 + $0x8] sm:$0xff]  }
 0x9c3   :  { %2779 = vmatpush3.bf16.msra.mxu1 %v2973_v16 }
 0x9c4   :  { %2784 = vmatprep.subr.bf16.mxu1 %v3166_v29 }
 0xa25   :  { %v1207_v51 = vpop.f32.mrb[16].mxu0 }
 0xa26   :  { %v2756_v52 = vpop.f32.mrb[17].mxu0  ;;  %v1214_v7 = vmul.f32 0.25, %v1207_v51 }
 0xa27   :  { %v1210_v55 = vpop.f32.mrb[18].mxu0 }
 0xa28   :  { %v1215_v58 = vmul.f32 0.25, %v1210_v55  ;;  %v2757_v59 = vpop.f32.mrb[19].mxu0  ;;  %v1216_v11 = vadd.f32 %v1214_v7, %v1158_v4 }
 0xa2a   :  { %v1217_v61 = vadd.f32 %v1215_v58, %v1159_v57  ;;  %v1219_v12 = vsel %vm1218_vm9, %v1216_v11, -inf }
 0xa2c   :  { %v1222_v62 = vsel %vm1218_vm9, %v1217_v61, -inf }
 0xa2d   :  { %1223 = vmax.xlane.f32.xlu0 %v1222_v62  ;;  %v1285_v0 = vpop.f32.mrb[20].mxu0 }
 0xa2e   :  { %v1292_v1 = vmul.f32 0.25, %v1285_v0  ;;  %v2762_v2 = vpop.f32.mrb[21].mxu0  ;;  %v2971_v0 = vld [vmem:[%s3865_s24 + $0x8] sm:$0xff]  }
 0xa2f   :  { %v1288_v3 = vpop.f32.mrb[22].mxu0 }
 0xa30   :  { %v1293_v5 = vmul.f32 0.25, %v1288_v3  ;;  %v2763_v23 = vpop.f32.mrb[23].mxu0  ;;  %v1294_v6 = vadd.f32 %v1292_v1, %v1158_v4 }
 0xa32   :  { %v1296_v8 = vsel %vm1218_vm9, %v1294_v6, -inf  ;;  %v1295_v9 = vadd.f32 %v1293_v5, %v1159_v57 }
 0xa33   :  { %1297 = vmax.xlane.f32.xlu1 %v1296_v8 }
 0xa34   :  { %v1299_v10 = vsel %vm1218_vm9, %v1295_v9, -inf }
 0xa37   :  { %1300 = vmax.xlane.f32.xlu1 %v1299_v10 }
 0xa3b   :  { %1220 = vmax.xlane.f32.xlu1 %v1219_v12 }
 0xa43   :  { %1371 = vrot.lane.b32.xlu0 %v1243_v39, %s3169_s5 }
 0xa62   :  { %1012 = vadd.xlane.f32.xlu0 %v1011_v17 }
 0xaba   :  { %v1224_v19 = vpop.xlane.xlu0 %1223 }
 0xabb   :  { %v1226_v21 = vsub.f32 %v1217_v61, %v1224_v19  ;;  %v2970_v61 = vld [vmem:[%s3865_s24] sm:$0xff]  }
 0xabd   :  { %v1229_v26 = vmul.f32 1.442695, %v1226_v21  ;;  %v2571_v21 = vld [vmem:[%s3868_s20] ss:$0 sm:$0xff] }
 0xabe   :  { %v1372_v52 = vpop.permute.xlu0 %1371 }
 0xac0   :  { %v1298_v18 = vpop.xlane.xlu1 %1297 }
 0xac1   :  { %v1302_v28 = vsub.f32 %v1294_v6, %v1298_v18 }
 0xac3   :  { %v1304_v63 = vmul.f32 1.442695, %v1302_v28 }
 0xac4   :  { %v1301_v20 = vpop.xlane.xlu1 %1300 }
 0xac5   :  { %v1303_v31 = vsub.f32 %v1295_v9, %v1301_v20  ;;  %v2549_v9 = vld [vmem:[%s3866_s30] ss:$0 sm:$0xff] }
 0xac7   :  { %v1306_v32 = vmul.f32 1.442695, %v1303_v31 }
 0xac8   :  { %v1221_v22 = vpop.xlane.xlu1 %1220 }
 0xac9   :  { %v1225_v25 = vsub.f32 %v1216_v11, %v1221_v22  ;;  %v2550_v11 = vld [vmem:[%s3867_s6] ss:$0 sm:$0xff] }
 0xacb   :  { %v1227_v30 = vmul.f32 1.442695, %v1225_v25 }
 0xacd   :  { %3008 = vpow2.f32 %v1227_v30 }
 0xace   :  { %3010 = vpow2.f32 %v1229_v26 }
 0xacf   :  { %3012 = vpow2.f32 %v1304_v63 }
 0xad0   :  { %3014 = vpow2.f32 %v1306_v32  ;;  %v2561_v32 = vld [vmem:[%s3869_s11] ss:$0 sm:$0xff] }
 0xad7   :  { %v3009_v33 = vpop.eup %3008 }
 0xad8   :  { %v1231_v34 = vsel %vm1218_vm9, %v3009_v33, 0.0  ;;  %v3011_v37 = vpop.eup %3010 }
 0xad9   :  { %1232 = vadd.xlane.f32.xlu1 %v1231_v34  ;;  %v1234_v38 = vsel %vm1218_vm9, %v3011_v37, 0.0  ;;  %v3013_v39 = vpop.eup %3012 }
 0xada   :  { %v1308_v41 = vsel %vm1218_vm9, %v3013_v39, 0.0  ;;  %v3015_v42 = vpop.eup %3014 }
 0xadb   :  { %v1311_v43 = vsel %vm1218_vm9, %v3015_v42, 0.0 }
 0xadd   :  { %1235 = vadd.xlane.f32.xlu1 %v1234_v38 }
 0xae1   :  { %1309 = vadd.xlane.f32.xlu1 %v1308_v41 }
 0xae5   :  { %1312 = vadd.xlane.f32.xlu1 %v1311_v43 }
 0xaef   :  { %v1013_v1 = vpop.xlane.xlu0 %1012 }
 0xaf0   :  { %v1014_v4 = vmul.f32 0.03125, %v1013_v1 }
 0xaf6   :  { %1323 = vrot.lane.b32.xlu1 %v1320_v40, %s3169_s5  ;;  %s3881_s5 = sld [smem:[#allocation35_spill]] }
 0xb1a   :  { %1007 = vadd.xlane.f32.xlu1 %v1006_v44 }
 0xb66   :  { %v1233_v27 = vpop.xlane.xlu1 %1232 }
 0xb6a   :  { %v1236_v24 = vpop.xlane.xlu1 %1235 }
 0xb6e   :  { %v1310_v47 = vpop.xlane.xlu1 %1309 }
 0xb6f   :  { %3016 = vrcp.f32 %v1310_v47  ;;  %v2974_v47 = vld [vmem:[%s3870_s15] sm:$0xff]  }
 0xb72   :  { %v1313_v48 = vpop.xlane.xlu1 %1312 }
 0xb73   :  { %3018 = vrcp.f32 %v1313_v48  ;;  %v2975_v48 = vld [vmem:[%s3870_s15 + $0x8] sm:$0xff]  }
 0xb74   :  { %3020 = vrcp.f32 %v1236_v24 }
 0xb75   :  { %3022 = vrcp.f32 %v1233_v27 }
 0xb76   :  { %v1324_v49 = vpop.permute.xlu1 %1323 }
 0xb77   :  { %2765 = vmatpush3.bf16.msra.mxu0 %v1324_v49 }
 0xb78   :  { %2770 = vmatprep.subr.bf16.mxu0 %v3166_v29 }
 0xb79   :  { %v3017_v35 = vpop.eup %3016 }
 0xb7a   :  { %v1316_v40 = vmul.f32 %v3017_v35, %v3013_v39 }
 0xb7d   :  { %v3019_v36 = vpop.eup %3018 }
 0xb7e   :  { %v1317_v50 = vmul.f32 %v3019_v36, %v3015_v42  ;;  %v3021_v55 = vpop.eup %3020 }
 0xb7f   :  { %v3023_v57 = vpop.eup %3022  ;;  %v1240_v58 = vmul.f32 %v3021_v55, %v3011_v37 }
 0xb80   :  { %v1321_v51 = vpack.c.bf16 %v1317_v50, %v1316_v40  ;;  %v1239_v59 = vmul.f32 %v3023_v57, %v3009_v33 }
 0xb82   :  { %2767 = vmatmul.mubr.msk.bf16.vlgmr.msra.gmra.mrb[24].mxu0 %vm1218_vm9, %v1321_v51  ;;  %v1244_v62 = vpack.c.bf16 %v1240_v58, %v1239_v59 }
 0xb83   :  { %2771 = vmatpush3.bf16.msra.mxu0 %v1372_v52  ;;  %2772 = vmatprep.mubr.msk.bf16.mxu0 %vm3167_vm2, %v3166_v29 }
 0xb84   :  { %2792 = vmatprep.subr.bf16.mxu0 %v3166_v29 }
 0xb8e   :  { %2773 = vmatmul.mubr.msk.bf16.vlgmr.msra.gmra.mrb[24].mxu0 %vm1218_vm9, %v1244_v62 }
 0xb8f   :  { %2793 = vmatpush3.bf16.msra.mxu0 %v2970_v61  ;;  %2796 = vmatprep.mubr.msk.bf16.mxu0 %vm3167_vm2, %v3166_v29 }
 0xb90   :  { %2794 = vmatprep.subr.bf16.mxu0 %v3166_v29 }
 0xb93   :  { %2795 = vmatpush3.bf16.msra.mxu0 %v2971_v0 }
 0xb94   :  { %2806 = vmatprep.subr.bf16.mxu0 %v3166_v29 }
 0xba7   :  { %v1008_v2 = vpop.xlane.xlu1 %1007 }
 0xba8   :  { %v1009_v3 = vmul.f32 0.03125, %v1008_v2 }
 0xbaa   :  { %v1015_v5 = vmul.f32 %v1009_v3, %v1009_v3  ;;  %v1017_v7 = vsub.f32 %v3624_v15, %v1009_v3 }
 0xbac   :  { %v1016_v23 = vsub.f32 %v1014_v4, %v1015_v5  ;;  %v2565_v4 = vld [vmem:[%s3871_s16] ss:$0 sm:$0xff] }
 0xbae   :  { %v1018_v6 = vadd.f32 1e-05, %v1016_v23 }
 0xbb0   :  { %3024 = vrsqrt.f32 %v1018_v6 }
 0xbba   :  { %v3025_v8 = vpop.eup %3024 }
 0xbbb   :  { %v1020_v10 = vmul.f32 %v3025_v8, %v1017_v7  ;;  %v2566_v8 = vld [vmem:[%s3872_s18] ss:$0 sm:$0xff] }
 0xbbd   :  { %v1027_v12 = vmul.f32 %v2549_v9, %v1020_v10 }
 0xbbf   :  { %v1034_v13 = vadd.f32 %v2550_v11, %v1027_v12 }
 0xbc1   :  { %v1603_v14 = vpack.c.bf16 %v1034_v13, %v1034_v13  ;;  %v2567_v13 = vld [vmem:[%s3873_s23] ss:$0 sm:$0xff] }
 0xbc3   :  { %2797 = vmatmul.mubr.msk.bf16.vlgmr.msra.gmra.mrb[28].mxu0 %vm368_vm1, %v1603_v14 }
 0xbc4   :  { %2808 = vmatprep.mubr.msk.bf16.mxu0 %vm3167_vm2, %v3166_v29 }
 0xc61   :  { %v1411_v17 = vpop.f32.mrb[24].mxu0 }
 0xc62   :  { %v2774_v18 = vpop.f32.mrb[25].mxu0 }
 0xc63   :  { %v1414_v15 = vpop.f32.mrb[26].mxu0 }
 0xc64   :  { %v1418_v19 = vpack.c.bf16 %v1414_v15, %v1411_v17  ;;  %v2775_v20 = vpop.f32.mrb[27].mxu0 }
 0xc66   :  { %2781 = vmatmul.mubr.msk.bf16.vlgmr.msra.gmra.mrb[20].mxu1 %vm368_vm1, %v1418_v19 }
 0xc67   :  { %2788 = vmatprep.mubr.msk.bf16.mxu1 %vm3167_vm2, %v3166_v29  ;;  %2785 = vmatpush3.bf16.msra.mxu1 %v2974_v47 }
 0xc68   :  { %2786 = vmatprep.subr.bf16.mxu1 %v3166_v29 }
 0xc6b   :  { %2787 = vmatpush3.bf16.msra.mxu1 %v2975_v48 }
 0xc6c   :  { %2800 = vmatprep.subr.bf16.mxu1 %v3166_v29 }
 0xc96   :  { %v1660_v22 = vpop.f32.mrb[28].mxu0 }
 0xc97   :  { %v3665_v25 = vadd.f32 %v2571_v21, %v1660_v22  ;;  %v2798_v26 = vpop.f32.mrb[29].mxu0 }
 0xc98   :  { %v1663_v28 = vpop.f32.mrb[30].mxu0 }
 0xc99   :  { %v1673_v30 = vpack.c.bf16 %v3665_v25, %v3665_v25  ;;  %v2799_v63 = vpop.f32.mrb[31].mxu0 }
 0xc9b   :  { %v1681_v31 = vsel %vm368_vm1, %v1673_v30, 0 }
 0xc9c   :  { %2807 = vmatpush3.bf16.xpose.msra.mxu0 %v1681_v31 }
 0xc9d   :  { %2824 = vmatprep.subr.bf16.mxu0 %v3166_v29 }
 0xd39   :  { %v1474_v33 = vpop.f32.mrb[20].mxu1 }
 0xd3a   :  { %v1475_v34 = vadd.f32 %v2561_v32, %v1474_v33  ;;  %v2782_v37 = vpop.f32.mrb[21].mxu1 }
 0xd3b   :  { %v1477_v38 = vpop.f32.mrb[22].mxu1 }
 0xd3c   :  { %v3673_v39 = vadd.f32 %v1475_v34, %v3523_v46  ;;  %v1478_v41 = vadd.f32 %v2561_v32, %v1477_v38  ;;  %v2783_v42 = vpop.f32.mrb[23].mxu1  ;;  %v1671_v32 = vld [vmem:[%s3874_s22] sm:$0xff] }
 0xd3e   :  { %v3676_v43 = vadd.f32 %v1478_v41, %v3531_v53  ;;  %v1485_v44 = vsel %vm368_vm1, %v3673_v39, 0.0  ;;  %v1493_v27 = vmul.f32 %v3673_v39, %v3673_v39 }
 0xd3f   :  { %1486 = vadd.xlane.f32.xlu1 %v1485_v44  ;;  %v1672_v44 = vld [vmem:[%s3874_s22 + $0x8] sm:$0xff] }
 0xd40   :  { %v1488_v45 = vsel %vm368_vm1, %v3676_v43, 0.0  ;;  %v1495_v46 = vsel %vm368_vm1, %v1493_v27, 0.0  ;;  %v1494_v24 = vmul.f32 %v3676_v43, %v3676_v43 }
 0xd42   :  { %v1498_v53 = vsel %vm368_vm1, %v1494_v24, 0.0 }
 0xd43   :  { %1489 = vadd.xlane.f32.xlu1 %v1488_v45 }
 0xd47   :  { %1496 = vadd.xlane.f32.xlu1 %v1495_v46 }
 0xd4b   :  { %1499 = vadd.xlane.f32.xlu1 %v1498_v53 }
 0xdcc   :  { %v1487_v49 = vpop.xlane.xlu1 %1486 }
 0xdcd   :  { %v1491_v36 = vmul.f32 0.03125, %v1487_v49 }
 0xdcf   :  { %v1503_v50 = vmul.f32 %v1491_v36, %v1491_v36  ;;  %v1507_v1 = vsub.f32 %v3673_v39, %v1491_v36 }
 0xdd0   :  { %v1490_v35 = vpop.xlane.xlu1 %1489 }
 0xdd1   :  { %v1492_v51 = vmul.f32 0.03125, %v1490_v35 }
 0xdd3   :  { %v1504_v58 = vmul.f32 %v1492_v51, %v1492_v51  ;;  %v1508_v5 = vsub.f32 %v3676_v43, %v1492_v51 }
 0xdd4   :  { %v1497_v40 = vpop.xlane.xlu1 %1496 }
 0xdd5   :  { %v1501_v52 = vmul.f32 0.03125, %v1497_v40 }
 0xdd7   :  { %v1505_v55 = vsub.f32 %v1501_v52, %v1503_v50 }
 0xdd8   :  { %v1500_v57 = vpop.xlane.xlu1 %1499 }
 0xdd9   :  { %v1509_v59 = vadd.f32 1e-05, %v1505_v55  ;;  %v1502_v61 = vmul.f32 0.03125, %v1500_v57 }
 0xddb   :  { %3026 = vrsqrt.f32 %v1509_v59  ;;  %v1506_v62 = vsub.f32 %v1502_v61, %v1504_v58 }
 0xddd   :  { %v1510_v0 = vadd.f32 1e-05, %v1506_v62 }
 0xddf   :  { %3028 = vrsqrt.f32 %v1510_v0 }
 0xde5   :  { %v3027_v2 = vpop.eup %3026 }
 0xde6   :  { %v1513_v3 = vmul.f32 %v3027_v2, %v1507_v1 }
 0xde8   :  { %v1521_v7 = vmul.f32 %v2565_v4, %v1513_v3 }
 0xde9   :  { %v3029_v23 = vpop.eup %3028 }
 0xdea   :  { %v1514_v6 = vmul.f32 %v3029_v23, %v1508_v5  ;;  %v1529_v10 = vadd.f32 %v2566_v8, %v1521_v7 }
 0xdec   :  { %v1522_v9 = vmul.f32 %v2565_v4, %v1514_v6 }
 0xdee   :  { %v1530_v11 = vadd.f32 %v2566_v8, %v1522_v9 }
 0xdf0   :  { %v1535_v12 = vpack.c.bf16 %v1530_v11, %v1529_v10 }
 0xdf2   :  { %2789 = vmatmul.mubr.msk.bf16.vlgmr.msra.gmra.mrb[24].mxu1 %vm368_vm1, %v1535_v12 }
 0xdf3   :  { %2801 = vmatpush3.bf16.xpose.msra.mxu1 %v1681_v31  ;;  %2802 = vmatprep.mubr.msk.bf16.mxu1 %vm3167_vm2, %v3166_v29 }
 0xdf4   :  { %2812 = vmatprep.subr.bf16.mxu1 %v3166_v29 }
 0xec5   :  { %v1592_v14 = vpop.f32.mrb[24].mxu1 }
 0xec6   :  { %v1593_v16 = vadd.f32 %v2567_v13, %v1592_v14  ;;  %v2790_v17 = vpop.f32.mrb[25].mxu1 }
 0xec7   :  { %v1595_v18 = vpop.f32.mrb[26].mxu1 }
 0xec8   :  { %v1596_v15 = vadd.f32 %v2567_v13, %v1595_v18  ;;  %v2791_v19 = vpop.f32.mrb[27].mxu1  ;;  %v1674_v20 = vmul.f32 %v3469_v56, %v1593_v16  ;;  %v1756_v21 = vmul.f32 %v3478_v60, %v1593_v16  ;;  %v2976_v16 = vld [vmem:[%s3875_s28] sm:$0xff]  }
 0xeca   :  { %v1675_v22 = vmul.f32 %v3469_v56, %v1596_v15  ;;  %v1757_v26 = vmul.f32 %v3478_v60, %v1596_v15 }
 0xecc   :  { %v1676_v28 = vpack.c.bf16 %v1675_v22, %v1674_v20  ;;  %v1758_v30 = vpack.c.bf16 %v1757_v26, %v1756_v21 }
 0xece   :  { %2803 = vmatmul.mubr.msk.bf16.vlgmr.msra.gmra.mrb[28].mxu1 %vm368_vm1, %v1676_v28  ;;  %2809 = vmatmul.mubr.msk.bf16.vlgmr.msra.gmra.mrb[32].mxu0 %vm368_vm1, %v1758_v30 }
 0xecf   :  { %2814 = vmatprep.mubr.msk.bf16.mxu1 %vm3167_vm2, %v3166_v29  ;;  %2828 = vmatprep.mubr.msk.bf16.mxu0 %vm3167_vm2, %v3166_v29 }
 0xed0   :  { %2825 = vmatpush3.bf16.msra.mxu0 %v2976_v16 }
 0xed1   :  { %2826 = vmatprep.subr.bf16.mxu0 %v3166_v29 }
 0xfa1   :  { %v1717_v63 = vpop.f32.mrb[28].mxu1  ;;  %v1796_v31 = vpop.f32.mrb[32].mxu0 }
 0xfa2   :  { %v1724_v33 = vmul.f32 0.25, %v1717_v63  ;;  %v1803_v34 = vmul.f32 0.25, %v1796_v31  ;;  %v2804_v37 = vpop.f32.mrb[29].mxu1  ;;  %v2810_v38 = vpop.f32.mrb[33].mxu0 }
 0xfa3   :  { %v1720_v41 = vpop.f32.mrb[30].mxu1  ;;  %v1799_v42 = vpop.f32.mrb[34].mxu0 }
 0xfa4   :  { %v1725_v45 = vmul.f32 0.25, %v1720_v41  ;;  %v1804_v27 = vmul.f32 0.25, %v1799_v42  ;;  %v2805_v46 = vpop.f32.mrb[31].mxu1  ;;  %v2811_v24 = vpop.f32.mrb[35].mxu0  ;;  %v1805_v53 = vadd.f32 %v1803_v34, %v1671_v32  ;;  %v1726_v49 = vadd.f32 %v1724_v33, %v1671_v32  ;;  %v2977_v41 = vld [vmem:[%s3875_s28 + $0x8] sm:$0xff]  }
 0xfa5   :  { %2827 = vmatpush3.bf16.msra.mxu0 %v2977_v41  ;;  %v2579_v24 = vld [vmem:[%s3876_s1] ss:$0 sm:$0xff] }
 0xfa6   :  { %v1807_v47 = vsel %vm532_vm7, %v1805_v53, -inf  ;;  %v1806_v48 = vadd.f32 %v1804_v27, %v1672_v44  ;;  %v1727_v36 = vadd.f32 %v1725_v45, %v1672_v44  ;;  %v1728_v40 = vsel %vm532_vm7, %v1726_v49, -inf  ;;  %2832 = vmatprep.subr.bf16.mxu0 %v3166_v29 }
 0xfa7   :  { %1808 = vmax.xlane.f32.xlu0 %v1807_v47 }
 0xfa8   :  { %v1810_v35 = vsel %vm532_vm7, %v1806_v48, -inf  ;;  %v1731_v50 = vsel %vm532_vm7, %v1727_v36, -inf }
 0xfa9   :  { %1811 = vmax.xlane.f32.xlu1 %v1810_v35 }
 0xfab   :  { %1729 = vmax.xlane.f32.xlu0 %v1728_v40 }
 0xfad   :  { %1732 = vmax.xlane.f32.xlu1 %v1731_v50 }
 0xfbe   :  { %1750 = vrot.lane.b32.xlu1 %v3469_v56, %s3170_s26 }
 0xfc1   :  { %1829 = vrot.lane.b32.xlu0 %v3478_v60, %s3170_s26 }
0x1034   :  { %v1809_v51 = vpop.xlane.xlu0 %1808 }
0x1035   :  { %v1813_v52 = vsub.f32 %v1805_v53, %v1809_v51 }
0x1036   :  { %v1812_v55 = vpop.xlane.xlu1 %1811 }
0x1037   :  { %v1815_v57 = vmul.f32 1.442695, %v1813_v52  ;;  %v1814_v58 = vsub.f32 %v1806_v48, %v1812_v55 }
0x1038   :  { %v1730_v59 = vpop.xlane.xlu0 %1729 }
0x1039   :  { %3030 = vpow2.f32 %v1815_v57  ;;  %v1734_v61 = vsub.f32 %v1726_v49, %v1730_v59  ;;  %v1817_v62 = vmul.f32 1.442695, %v1814_v58  ;;  %v2978_v58 = vld [vmem:[%s3877_s2] sm:$0xff]   ;;  %v2979_v59 = vld [vmem:[%s3877_s2 + $0x8] sm:$0xff]  }
0x103a   :  { %v1733_v0 = vpop.xlane.xlu1 %1732 }
0x103b   :  { %v1736_v1 = vmul.f32 1.442695, %v1734_v61  ;;  %v1735_v2 = vsub.f32 %v1727_v36, %v1733_v0 }
0x103c   :  { %v1830_v11 = vpop.permute.xlu0 %1829 }
0x103d   :  { %3032 = vpow2.f32 %v1736_v1  ;;  %v1738_v3 = vmul.f32 1.442695, %v1735_v2  ;;  %v1832_v13 = vmul.f32 %v1830_v11, %v3665_v25  ;;  %v2583_v11 = vld [vmem:[%s3878_s7] ss:$0 sm:$0xff] }
0x103e   :  { %3034 = vpow2.f32 %v1817_v62  ;;  %v1751_v9 = vpop.permute.xlu1 %1750 }
0x103f   :  { %3036 = vpow2.f32 %v1738_v3  ;;  %v1753_v10 = vmul.f32 %v1751_v9, %v3665_v25  ;;  %v1833_v14 = vpack.c.bf16 %v1832_v13, %v1832_v13 }
0x1041   :  { %v1754_v12 = vpack.c.bf16 %v1753_v10, %v1753_v10 }
0x1043   :  { %v3031_v4 = vpop.eup %3030 }
0x1044   :  { %v1819_v56 = vsel %vm532_vm7, %v3031_v4, 0.0 }
0x1045   :  { %1820 = vadd.xlane.f32.xlu1 %v1819_v56 }
0x1047   :  { %v3033_v60 = vpop.eup %3032 }
0x1048   :  { %v3035_v5 = vpop.eup %3034  ;;  %v1740_v23 = vsel %vm532_vm7, %v3033_v60, 0.0 }
0x1049   :  { %v3037_v6 = vpop.eup %3036  ;;  %1741 = vadd.xlane.f32.xlu0 %v1740_v23  ;;  %v1822_v8 = vsel %vm532_vm7, %v3035_v5, 0.0 }
0x104a   :  { %v1743_v7 = vsel %vm532_vm7, %v3037_v6, 0.0 }
0x104b   :  { %1744 = vadd.xlane.f32.xlu1 %v1743_v7 }
0x104d   :  { %1823 = vadd.xlane.f32.xlu0 %v1822_v8 }
0x105c   :  { %1886 = vrot.lane.b32.xlu1 %v1754_v12, %s3168_s0 }
0x1063   :  { %1836 = vrot.lane.b32.xlu0 %v1833_v14, %s3168_s0  ;;  %s3880_s0 = sld [smem:[#allocation36_spill]] }
0x10d2   :  { %v1821_v17 = vpop.xlane.xlu1 %1820 }
0x10d3   :  { %3038 = vrcp.f32 %v1821_v17 }
0x10d6   :  { %v1742_v18 = vpop.xlane.xlu0 %1741 }
0x10d8   :  { %v1745_v21 = vpop.xlane.xlu1 %1744 }
0x10da   :  { %v1824_v15 = vpop.xlane.xlu0 %1823 }
0x10db   :  { %3040 = vrcp.f32 %v1824_v15 }
0x10dc   :  { %3042 = vrcp.f32 %v1745_v21  ;;  %v1887_v30 = vpop.permute.xlu1 %1886 }
0x10dd   :  { %v3039_v25 = vpop.eup %3038  ;;  %3044 = vrcp.f32 %v1742_v18  ;;  %v1892_v31 = vsel %vm627_vm8, %v1887_v30, 0  ;;  %v2584_v18 = vld [vmem:[%s3879_s10] ss:$0 sm:$0xff] }
0x10de   :  { %v1837_v19 = vpop.permute.xlu0 %1836  ;;  %v1827_v26 = vmul.f32 %v3039_v25, %v3031_v4  ;;  %v2980_v25 = vld [vmem:[%s3880_s0] sm:$0xff]  }
0x10df   :  { %v1842_v20 = vsel %vm627_vm8, %v1837_v19, 0  ;;  %v2984_v30 = vld [vmem:[%s3880_s0 + $0x20] sm:$0xff]  }
0x10e0   :  { %2813 = vmatpush3.bf16.msra.mxu1 %v1842_v20 }
0x10e1   :  { %2818 = vmatprep.subr.bf16.mxu1 %v3166_v29 }
0x10e5   :  { %v3041_v22 = vpop.eup %3040 }
0x10e6   :  { %v1828_v28 = vmul.f32 %v3041_v22, %v3035_v5  ;;  %v3043_v32 = vpop.eup %3042  ;;  %v2981_v22 = vld [vmem:[%s3880_s0 + $0x8] sm:$0xff]  }
0x10e7   :  { %v3045_v33 = vpop.eup %3044  ;;  %v1749_v34 = vmul.f32 %v3043_v32, %v3037_v6  ;;  %v2987_v32 = vld [vmem:[%s3880_s0 + $0x38] sm:$0xff]  }
0x10e8   :  { %v1834_v63 = vpack.c.bf16 %v1828_v28, %v1827_v26  ;;  %v1748_v37 = vmul.f32 %v3045_v33, %v3033_v60  ;;  %v2982_v26 = vld [vmem:[%s3880_s0 + $0x10] sm:$0xff]   ;;  %v2983_v28 = vld [vmem:[%s3880_s0 + $0x18] sm:$0xff]   ;;  %v2585_v33 = vld [vmem:[%s3881_s5] ss:$0 sm:$0xff] }
0x10ea   :  { %2815 = vmatmul.mubr.msk.bf16.vlgmr.msra.gmra.mrb[32].mxu1 %vm532_vm7, %v1834_v63  ;;  %v1755_v38 = vpack.c.bf16 %v1749_v34, %v1748_v37  ;;  %v2985_v63 = vld [vmem:[%s3880_s0 + $0x28] sm:$0xff]  }
0x10eb   :  { %2819 = vmatpush3.bf16.msra.mxu1 %v1892_v31  ;;  %2820 = vmatprep.mubr.msk.bf16.mxu1 %vm3167_vm2, %v3166_v29  ;;  %v2986_v31 = vld [vmem:[%s3880_s0 + $0x30] sm:$0xff]  }
0x10ec   :  { %2840 = vmatprep.subr.bf16.mxu1 %v3166_v29 }
0x10f6   :  { %2821 = vmatmul.mubr.msk.bf16.vlgmr.msra.gmra.mrb[32].mxu1 %vm532_vm7, %v1755_v38 }
0x10f7   :  { %2856 = vmatprep.mubr.msk.bf16.mxu1 %vm3167_vm2, %v3166_v29  ;;  %2841 = vmatpush3.bf16.msra.mxu1 %v2980_v25 }
0x10f8   :  { %2842 = vmatprep.subr.bf16.mxu1 %v3166_v29 }
0x10fb   :  { %2843 = vmatpush3.bf16.msra.mxu1 %v2981_v22 }
0x10fc   :  { %2844 = vmatprep.subr.bf16.mxu1 %v3166_v29 }
0x10ff   :  { %2845 = vmatpush3.bf16.msra.mxu1 %v2982_v26 }
0x1100   :  { %2846 = vmatprep.subr.bf16.mxu1 %v3166_v29 }
0x1103   :  { %2847 = vmatpush3.bf16.msra.mxu1 %v2983_v28 }
0x1104   :  { %2848 = vmatprep.subr.bf16.mxu1 %v3166_v29 }
0x1107   :  { %2849 = vmatpush3.bf16.msra.mxu1 %v2984_v30  ;;  %v2598_v30 = vld [vmem:[%s3883_s13] ss:$0 sm:$0xff] }
0x1108   :  { %2850 = vmatprep.subr.bf16.mxu1 %v3166_v29 }
0x110b   :  { %2851 = vmatpush3.bf16.msra.mxu1 %v2985_v63 }
0x110c   :  { %2852 = vmatprep.subr.bf16.mxu1 %v3166_v29 }
0x110f   :  { %2853 = vmatpush3.bf16.msra.mxu1 %v2986_v31 }
0x1110   :  { %2854 = vmatprep.subr.bf16.mxu1 %v3166_v29 }
0x1113   :  { %2855 = vmatpush3.bf16.msra.mxu1 %v2987_v32 }
0x11c9   :  { %v1928_v42 = vpop.f32.mrb[32].mxu1 }
0x11ca   :  { %v2822_v44 = vpop.f32.mrb[33].mxu1 }
0x11cb   :  { %v1931_v45 = vpop.f32.mrb[34].mxu1 }
0x11cc   :  { %v1935_v27 = vpack.c.bf16 %v1931_v45, %v1928_v42  ;;  %v2823_v46 = vpop.f32.mrb[35].mxu1 }
0x11ce   :  { %2829 = vmatmul.mubr.msk.bf16.vlgmr.msra.gmra.mrb[36].mxu0 %vm368_vm1, %v1935_v27 }
0x11cf   :  { %2836 = vmatprep.mubr.msk.bf16.mxu0 %vm3167_vm2, %v3166_v29  ;;  %2833 = vmatpush3.bf16.msra.mxu0 %v2978_v58 }
0x11d0   :  { %2834 = vmatprep.subr.bf16.mxu0 %v3166_v29 }
0x11d3   :  { %2835 = vmatpush3.bf16.msra.mxu0 %v2979_v59 }
0x11d4   :  { %2860 = vmatprep.subr.bf16.mxu0 %v3166_v29 }
0x12a1   :  { %v1991_v53 = vpop.f32.mrb[36].mxu0 }
0x12a2   :  { %v1992_v47 = vadd.f32 %v2579_v24, %v1991_v53  ;;  %v2830_v48 = vpop.f32.mrb[37].mxu0 }
0x12a3   :  { %v1994_v49 = vpop.f32.mrb[38].mxu0 }
0x12a4   :  { %v3746_v35 = vadd.f32 %v1992_v47, %v3673_v39  ;;  %v1995_v36 = vadd.f32 %v2579_v24, %v1994_v49  ;;  %v2831_v40 = vpop.f32.mrb[39].mxu0 }
0x12a6   :  { %v3749_v50 = vadd.f32 %v1995_v36, %v3676_v43  ;;  %v2002_v51 = vsel %vm368_vm1, %v3746_v35, 0.0  ;;  %v2010_v39 = vmul.f32 %v3746_v35, %v3746_v35 }
0x12a7   :  { %2003 = vadd.xlane.f32.xlu1 %v2002_v51 }
0x12a8   :  { %v2005_v52 = vsel %vm368_vm1, %v3749_v50, 0.0  ;;  %v2011_v55 = vmul.f32 %v3749_v50, %v3749_v50  ;;  %v2012_v43 = vsel %vm368_vm1, %v2010_v39, 0.0 }
0x12a9   :  { %2006 = vadd.xlane.f32.xlu0 %v2005_v52 }
0x12aa   :  { %v2015_v57 = vsel %vm368_vm1, %v2011_v55, 0.0 }
0x12ab   :  { %2016 = vadd.xlane.f32.xlu1 %v2015_v57 }
0x12ad   :  { %2013 = vadd.xlane.f32.xlu0 %v2012_v43 }
0x1334   :  { %v2004_v61 = vpop.xlane.xlu1 %2003 }
0x1335   :  { %v2008_v0 = vmul.f32 0.03125, %v2004_v61 }
0x1336   :  { %v2007_v62 = vpop.xlane.xlu0 %2006 }
0x1337   :  { %v2009_v1 = vmul.f32 0.03125, %v2007_v62  ;;  %v2020_v60 = vmul.f32 %v2008_v0, %v2008_v0  ;;  %v2024_v12 = vsub.f32 %v3746_v35, %v2008_v0  ;;  %v2597_v0 = vld [vmem:[%s3882_s9] ss:$0 sm:$0xff] }
0x1338   :  { %v2017_v2 = vpop.xlane.xlu1 %2016 }
0x1339   :  { %v2021_v3 = vmul.f32 %v2009_v1, %v2009_v1  ;;  %v2019_v4 = vmul.f32 0.03125, %v2017_v2  ;;  %v2025_v9 = vsub.f32 %v3749_v50, %v2009_v1 }
0x133a   :  { %v2014_v56 = vpop.xlane.xlu0 %2013 }
0x133b   :  { %v2023_v5 = vsub.f32 %v2019_v4, %v2021_v3  ;;  %v2018_v23 = vmul.f32 0.03125, %v2014_v56 }
0x133d   :  { %v2027_v6 = vadd.f32 1e-05, %v2023_v5  ;;  %v2022_v7 = vsub.f32 %v2018_v23, %v2020_v60 }
0x133f   :  { %3046 = vrsqrt.f32 %v2027_v6  ;;  %v2026_v8 = vadd.f32 1e-05, %v2022_v7 }
0x1341   :  { %3048 = vrsqrt.f32 %v2026_v8 }
0x1349   :  { %v3047_v10 = vpop.eup %3046 }
0x134a   :  { %v2031_v13 = vmul.f32 %v3047_v10, %v2025_v9  ;;  %v2988_v10 = vld [vmem:[%s3410_s12] sm:$0xff]  }
0x134b   :  { %v3049_v14 = vpop.eup %3048 }
0x134c   :  { %v2030_v16 = vmul.f32 %v3049_v14, %v2024_v12  ;;  %v2039_v17 = vmul.f32 %v2583_v11, %v2031_v13 }
0x134e   :  { %v2038_v15 = vmul.f32 %v2583_v11, %v2030_v16  ;;  %v2047_v20 = vadd.f32 %v2584_v18, %v2039_v17  ;;  %v2989_v11 = vld [vmem:[%s3410_s12 + $0x8] sm:$0xff]   ;;  %s3884_s12 = sld [smem:[#allocation16_spill]] }
0x1350   :  { %v2046_v19 = vadd.f32 %v2584_v18, %v2038_v15 }
0x1352   :  { %v2052_v21 = vpack.c.bf16 %v2047_v20, %v2046_v19 }
0x1354   :  { %2837 = vmatmul.mubr.msk.bf16.vlgmr.msra.gmra.mrb[40].mxu0 %vm368_vm1, %v2052_v21 }
0x1355   :  { %2864 = vmatprep.mubr.msk.bf16.mxu0 %vm3167_vm2, %v3166_v29  ;;  %2861 = vmatpush3.bf16.msra.mxu0 %v2988_v10 }
0x1356   :  { %2862 = vmatprep.subr.bf16.mxu0 %v3166_v29 }
0x1359   :  { %2863 = vmatpush3.bf16.msra.mxu0 %v2989_v11 }
0x1427   :  { %v2109_v34 = vpop.f32.mrb[40].mxu0 }
0x1428   :  { %v2110_v37 = vadd.f32 %v2585_v33, %v2109_v34  ;;  %v2838_v38 = vpop.f32.mrb[41].mxu0 }
0x1429   :  { %v2112_v41 = vpop.f32.mrb[42].mxu0 }
0x142a   :  { %v2116_v42 = vmul.f32 %v2110_v37, %v2110_v37  ;;  %v2113_v44 = vadd.f32 %v2585_v33, %v2112_v41  ;;  %v2839_v45 = vpop.f32.mrb[43].mxu0 }
0x142b   :  { %v2600_v45 = vld [vmem:[#allocation2] ss:$0 sm:$0xff] }
0x142c   :  { %v2118_v27 = vmul.f32 %v2116_v42, %v2110_v37  ;;  %v2117_v46 = vmul.f32 %v2113_v44, %v2113_v44 }
0x142e   :  { %v2120_v24 = vmul.f32 0.044715, %v2118_v27  ;;  %v2119_v53 = vmul.f32 %v2117_v46, %v2113_v44 }
0x1430   :  { %v2122_v47 = vadd.f32 %v2120_v24, %v2110_v37  ;;  %v2121_v48 = vmul.f32 0.044715, %v2119_v53 }
0x1432   :  { %v2124_v49 = vmul.f32 0.7978846, %v2122_v47  ;;  %v2123_v36 = vadd.f32 %v2121_v48, %v2113_v44 }
0x1434   :  { %3050 = vtanh.f32 %v2124_v49  ;;  %v2125_v40 = vmul.f32 0.7978846, %v2123_v36  ;;  %v2388_v49 = vld [vmem:[%s3884_s12 + $0x8] sm:$0xff]  ;;  %v2387_v36 = vld [vmem:[%s3884_s12] sm:$0xff] }
0x1436   :  { %3052 = vtanh.f32 %v2125_v40 }
0x143e   :  { %v3051_v51 = vpop.eup %3050 }
0x143f   :  { %v2128_v52 = vadd.f32 1.0, %v3051_v51 }
0x1440   :  { %v3053_v55 = vpop.eup %3052 }
0x1441   :  { %v2130_v39 = vmul.f32 0.5, %v2128_v52  ;;  %v2129_v57 = vadd.f32 1.0, %v3053_v55 }
0x1443   :  { %v2131_v43 = vmul.f32 0.5, %v2129_v57  ;;  %v2132_v58 = vmul.f32 %v2130_v39, %v2110_v37  ;;  %v2599_v37 = vld [vmem:[%s3405_s4] ss:$0 sm:$0xff]  ;;  %s3885_s4 = sld [smem:[#allocation17_spill]] }
0x1445   :  { %v2133_v59 = vmul.f32 %v2131_v43, %v2113_v44 }
0x1447   :  { %v2150_v61 = vpack.c.bf16 %v2133_v59, %v2132_v58 }
0x1449   :  { %2857 = vmatmul.mubr.bf16.vlgmr.msra.gmra.mrb[36].mxu1 %v2150_v61 }
0x151c   :  { %v2233_v62 = vpop.f32.mrb[36].mxu1 }
0x151d   :  { %v2240_v1 = vadd.f32 %v2233_v62, %v3746_v35  ;;  %v2858_v2 = vpop.f32.mrb[37].mxu1 }
0x151e   :  { %v2236_v3 = vpop.f32.mrb[38].mxu1 }
0x151f   :  { %v2249_v4 = vadd.f32 %v2597_v0, %v2240_v1  ;;  %v2241_v56 = vadd.f32 %v2236_v3, %v3749_v50  ;;  %v2859_v60 = vpop.f32.mrb[39].mxu1 }
0x1521   :  { %v2250_v5 = vadd.f32 %v2597_v0, %v2241_v56  ;;  %v2253_v23 = vsel %vm368_vm1, %v2249_v4, 0.0  ;;  %v2261_v6 = vmul.f32 %v2249_v4, %v2249_v4 }
0x1522   :  { %2254 = vadd.xlane.f32.xlu0 %v2253_v23 }
0x1523   :  { %v2256_v7 = vsel %vm368_vm1, %v2250_v5, 0.0  ;;  %v2262_v8 = vmul.f32 %v2250_v5, %v2250_v5  ;;  %v2263_v9 = vsel %vm368_vm1, %v2261_v6, 0.0  ;;  %v2403_v6 = vld [vmem:[%s3885_s4] sm:$0xff] }
0x1524   :  { %2257 = vadd.xlane.f32.xlu1 %v2256_v7 }
0x1525   :  { %v2266_v35 = vsel %vm368_vm1, %v2262_v8, 0.0 }
0x1526   :  { %2264 = vadd.xlane.f32.xlu0 %v2263_v9  ;;  %v2404_v9 = vld [vmem:[%s3885_s4 + $0x8] sm:$0xff] }
0x1528   :  { %2267 = vadd.xlane.f32.xlu1 %v2266_v35 }
0x15af   :  { %v2255_v50 = vpop.xlane.xlu0 %2254 }
0x15b0   :  { %v2259_v12 = vmul.f32 0.03125, %v2255_v50 }
0x15b1   :  { %v2258_v13 = vpop.xlane.xlu1 %2257 }
0x15b2   :  { %v2260_v14 = vmul.f32 0.03125, %v2258_v13  ;;  %v2271_v17 = vmul.f32 %v2259_v12, %v2259_v12  ;;  %v2275_v29 = vsub.f32 %v2249_v4, %v2259_v12  ;;  %v2423_v13 = vsel %vm2409_vm12, %v2403_v6, 0.0 }
0x15b3   :  { %v2265_v16 = vpop.xlane.xlu0 %2264 }
0x15b4   :  { %v2269_v18 = vmul.f32 0.03125, %v2265_v16  ;;  %v2272_v19 = vmul.f32 %v2260_v14, %v2260_v14  ;;  %v2276_v63 = vsub.f32 %v2250_v5, %v2260_v14  ;;  %v2424_v14 = vsel %vm2409_vm12, %v2404_v9, 0.0 }
0x15b5   :  { %v2268_v15 = vpop.xlane.xlu1 %2267 }
0x15b6   :  { %v2273_v20 = vsub.f32 %v2269_v18, %v2271_v17  ;;  %v2270_v21 = vmul.f32 0.03125, %v2268_v15  ;;  %v2425_v17 = vadd.f32 %v2424_v14, %v2423_v13 }
0x15b8   :  { %v2277_v25 = vadd.f32 1e-05, %v2273_v20  ;;  %v2274_v22 = vsub.f32 %v2270_v21, %v2272_v19 }
0x15ba   :  { %3054 = vrsqrt.f32 %v2277_v25  ;;  %v2278_v26 = vadd.f32 1e-05, %v2274_v22 }
0x15bc   :  { %3056 = vrsqrt.f32 %v2278_v26 }
0x15c4   :  { %v3055_v28 = vpop.eup %3054 }
0x15c5   :  { %v2281_v31 = vmul.f32 %v3055_v28, %v2275_v29 }
0x15c6   :  { %v3057_v32 = vpop.eup %3056 }
0x15c7   :  { %v2282_v33 = vmul.f32 %v3057_v32, %v2276_v63  ;;  %v2289_v34 = vmul.f32 %v2598_v30, %v2281_v31 }
0x15c9   :  { %v2290_v38 = vmul.f32 %v2598_v30, %v2282_v33  ;;  %v2297_v41 = vadd.f32 %v2599_v37, %v2289_v34 }
0x15cb   :  { %v2298_v42 = vadd.f32 %v2599_v37, %v2290_v38 }
0x15cd   :  { %v2303_v44 = vpack.c.bf16 %v2298_v42, %v2297_v41 }
0x15cf   :  { %2865 = vmatmul.mubr.msk.bf16.vlgmr.msra.gmra.mrb[44].mxu0 %vm368_vm1, %v2303_v44 }
0x16a2   :  { %v2360_v27 = vpop.f32.mrb[44].mxu0 }
0x16a3   :  { %v2361_v46 = vadd.f32 %v2600_v45, %v2360_v27  ;;  %v2866_v24 = vpop.f32.mrb[45].mxu0 }
0x16a4   :  { %v2363_v53 = vpop.f32.mrb[46].mxu0 }
0x16a5   :  { %v2364_v47 = vadd.f32 %v2600_v45, %v2363_v53  ;;  %2367 = vmax.xlane.f32.xlu0 %v2361_v46  ;;  %v2867_v48 = vpop.f32.mrb[47].mxu0 }
0x16a7   :  { %2369 = vmax.xlane.f32.xlu1 %v2364_v47 }
0x16b8   :  { %2393 = vperm.xlu1 %2941, %v2388_v49  }
0x16bb   :  { %2390 = vperm.xlu0 %2940, %v2387_v36  }
0x1732   :  { %v2368_v40 = vpop.xlane.xlu0 %2367 }
0x1733   :  { %v2371_v51 = vsub.f32 %v2361_v46, %v2368_v40 }
0x1734   :  { %v2370_v52 = vpop.xlane.xlu1 %2369 }
0x1735   :  { %v2373_v55 = vmul.f32 1.442695, %v2371_v51  ;;  %v2372_v39 = vsub.f32 %v2364_v47, %v2370_v52 }
0x1737   :  { %3058 = vpow2.f32 %v2373_v55  ;;  %v2375_v57 = vmul.f32 1.442695, %v2372_v39 }
0x1738   :  { %v2394_v61 = vpop.permute.xlu1 %2393 }
0x1739   :  { %3060 = vpow2.f32 %v2375_v57  ;;  %vm2396_vm11 = vcmp.eq.s32.totalorder %v3465_v54, %v2394_v61 }
0x173a   :  { %v2391_v43 = vpop.permute.xlu0 %2390  ;;  %v2398_v0 = vsel %vm2396_vm11, %v2364_v47, 0.0 }
0x173b   :  { %vm2395_vm10 = vcmp.eq.s32.totalorder %v3465_v54, %v2391_v43 }
0x173c   :  { %v2397_v62 = vsel %vm2395_vm10, %v2361_v46, 0.0 }
0x1741   :  { %v3059_v58 = vpop.eup %3058 }
0x1742   :  { %2377 = vadd.xlane.f32.xlu1 %v3059_v58 }
0x1743   :  { %v3061_v59 = vpop.eup %3060 }
0x1744   :  { %2379 = vadd.xlane.f32.xlu0 %v3061_v59 }
0x1746   :  { %2399 = vadd.xlane.f32.xlu1 %v2397_v62 }
0x174a   :  { %2401 = vadd.xlane.f32.xlu1 %v2398_v0 }
0x17cf   :  { %v2378_v1 = vpop.xlane.xlu1 %2377 }
0x17d0   :  { %3062 = vlog2.f32 %v2378_v1 }
0x17d1   :  { %v2380_v2 = vpop.xlane.xlu0 %2379 }
0x17d2   :  { %3064 = vlog2.f32 %v2380_v2 }
0x17d3   :  { %v2400_v4 = vpop.xlane.xlu1 %2399 }
0x17d7   :  { %v2402_v35 = vpop.xlane.xlu1 %2401 }
0x17da   :  { %v3063_v3 = vpop.eup %3062 }
0x17db   :  { %v2382_v56 = vmul.f32 0.6931472, %v3063_v3 }
0x17dc   :  { %v3065_v60 = vpop.eup %3064 }
0x17dd   :  { %v2384_v5 = vmul.f32 0.6931472, %v3065_v60  ;;  %v2385_v23 = vadd.f32 %v2382_v56, %v2368_v40 }
0x17df   :  { %v2405_v7 = vsub.f32 %v2385_v23, %v2400_v4  ;;  %v2386_v8 = vadd.f32 %v2384_v5, %v2370_v52 }
0x17e1   :  { %v2407_v54 = vmul.f32 %v2405_v7, %v2403_v6  ;;  %v2406_v10 = vsub.f32 %v2386_v8, %v2402_v35 }
0x17e3   :  { %v2408_v11 = vmul.f32 %v2406_v10, %v2404_v9  ;;  %v2410_v50 = vsel %vm2409_vm12, %v2407_v54, 0.0 }
0x17e5   :  { %v2411_v12 = vsel %vm2409_vm12, %v2408_v11, 0.0 }
0x17e6   :  { %v2412_v16 = vadd.f32 %v2411_v12, %v2410_v50 }
0x17e8   :  { %2413 = vadd.xlane.f32.xlu1 %v2412_v16 }
0x17ec   :  { %2426 = vadd.xlane.f32.xlu1 %v2425_v17 }
0x1875   :  { %v2414_v18 = vpop.xlane.xlu1 %2413 }
0x1876   :  { %v2415_v15 = vrot.slane %v2414_v18, 4 }
0x1878   :  { %v2416_v19 = vadd.f32 %v2415_v15, %v2414_v18 }
0x1879   :  { %v2427_v20 = vpop.xlane.xlu1 %2426 }
0x187a   :  { %v2417_v21 = vrot.slane %v2416_v19, 2  ;;  %v2428_v25 = vrot.slane %v2427_v20, 4 }
0x187c   :  { %v2429_v22 = vadd.f32 %v2428_v25, %v2427_v20  ;;  %v2418_v26 = vadd.f32 %v2417_v21, %v2416_v19 }
0x187e   :  { %v2430_v29 = vrot.slane %v2429_v22, 2  ;;  %v2419_v28 = vrot.slane %v2418_v26, 1 }
0x1880   :  { %v2431_v30 = vadd.f32 %v2430_v29, %v2429_v22  ;;  %v2420_v63 = vadd.f32 %v2419_v28, %v2418_v26 }
0x1882   :  { %2880 = vpush %v2420_v63  ;;  %v2432_v31 = vrot.slane %v2431_v30, 1 }
0x1884   :  { %v2433_v32 = vadd.f32 %v2432_v31, %v2431_v30 }
0x1886   :  { %2882 = vpush %v2433_v32 }
0x18b3   :  { %s2881_s17 = spop %2880 }
0x18b4   :  { %v2422_v38 = vstv %s2881_s17 }
0x18b7   :  { %s2883_s21 = spop %2882 }
0x18b8   :  { %v2435_v33 = vstv %s2883_s21 }
0x18b9   :  { %v2436_v34 = vmax.f32 %v2435_v33, 1.0 }
0x18bb   :  { %3066 = vrcp.f32 %v2436_v34 }
0x18c5   :  { %v3067_v37 = vpop.eup %3066 }
0x18c6   :  { %v2438_v41 = vmul.f32 %v3067_v37, %v2422_v38 }
0x18c8   :  { %2440 = vst.msk [vmem:[#allocation5] sm:$0x1] %vm2439_vm13, %v2438_v41 }
0x18c9   :  { %3101 = shalt.err (!%p3098_p12)
}
0x18ca   :  { %s3102_s14 = scalar_lea.hbm %s3418_s27, 16 }
0x18cb   :  { %p3103_p13 = scmp.ne.s32.totalorder %s3418_s27, %s3102_s14  ;;  %p3106_p0 = scmp.lt.u32.totalorder %s3102_s14, %s3418_s27 }
0x18cd   :  { %p3108_p1 = pnand %p3106_p0, %p3103_p13 }
0x18cf   :  { %3111 = shalt.err (!%p3108_p1)
}
0x18d0   :  { %2450 = dma.vmem_to_hbm [thread:$0]  %s2448_s29, 16, %s3418_s27, [#allocation4]  }
0x18d1   :  { %3114 = dma.done.wait [#allocation4], 16  }
0x18d2   :  { %3115 = vsyncadd [#allocation4], 4294967280 }
0x18d3   :  { %2454 = vsyncpa [#allocation3], 1 }
0x18d4   :  { %2455 = vsyncpa [#allocation4], 1 }

</bundles_post_ra>
